<compile_context>
chip_gen: v7x
topology: tpu7x:2x2x1
jax: 0.10.0
libtpu: 0.0.40
codegen_flags: <defaults>
</compile_context>

<pallas_src>
import jax
import jax.numpy as jnp
from jax.experimental import pallas as pl
from jax.experimental.pallas import tpu as pltpu


# -------- fused conv3x3(s1,p1) + BN + ReLU + maxpool2x2 (one kernel per stage) -----

def _make_conv_pool_kernel(R, Wo, KL, Cout, n_ky):
    """R conv rows per step, Wo pooled cols, KL input lanes, n_ky ky views."""
    M = R * Wo

    def kernel(s_ref, w_ref, sc_ref, sh_ref, o_ref):
        s = s_ref[0, 0]                          # (R or R+2, Wp, KL) bf16
        sl = s[:, 0:Wo, :]                       # left  pair column (u = wo)
        sr = s[:, 1:Wo + 1, :]                   # right pair column (u = wo+1)
        acc = None
        for ky in range(n_ky):
            L = sl[ky:ky + R].reshape(M, KL)
            Rv = sr[ky:ky + R].reshape(M, KL)
            d = (jnp.dot(L, w_ref[ky, 0], preferred_element_type=jnp.float32) +
                 jnp.dot(Rv, w_ref[ky, 1], preferred_element_type=jnp.float32))
            acc = d if acc is None else acc + d
        acc = acc * sc_ref[...] + sh_ref[...]    # folded conv-bias + BN (pre-max!)
        m = jnp.maximum(acc[:, :Cout], acc[:, Cout:])   # pool over the W pair
        m = m.reshape(R // 2, 2, Wo, Cout)
        m = jnp.maximum(m[:, 0], m[:, 1])               # pool over the H pair
        o_ref[0] = jnp.maximum(m, 0.0).astype(o_ref.dtype)   # ReLU

    return kernel


def conv_bn_relu_pool(x_nhwc, layer, *, rows):
    """Fused 3x3/s1/p1 conv + inference BN + ReLU + 2x2 maxpool (bf16 in/out)."""
    N, H, W, C = x_nhwc.shape
    wpack = layer["w"]                           # (n_ky, 2, KL, 2*Cout) bf16
    n_ky, _, KL, Cout2 = wpack.shape
    Cout = Cout2 // 2
    R = rows
    assert H % 2 == 0 and W % 2 == 0 and R % 2 == 0 and H % R == 0
    Ho, Wo, Wp = H // 2, W // 2, W // 2 + 1
    nb = H // R

    # Glue: pad spatially and merge column pairs into the lane dim (the pair
    # merge is a free reshape).  conv1 additionally folds the 3 ky taps into
    # lanes (tiny Cin); conv2-4 instead get per-block row windows with a 2-row
    # halo and form the ky views inside the kernel, so only ~1x of the
    # activation is written/read through HBM by the glue.
    xp = jnp.pad(x_nhwc, ((0, 0), (1, 1), (1, 1), (0, 0)))
    if n_ky == 1:
        assert KL == 6 * C
        slab = jnp.concatenate([xp[:, ky:ky + H] for ky in range(3)], axis=-1)
        slab = slab.reshape(N, nb, R, Wp, KL)
        rw = R
    else:
        assert n_ky == 3 and KL == 2 * C
        xp = xp.reshape(N, H + 2, Wp, KL)
        slab = jnp.stack([xp[:, i * R:i * R + R + 2] for i in range(nb)], axis=1)
        rw = R + 2

    return pl.pallas_call(
        _make_conv_pool_kernel(R, Wo, KL, Cout, n_ky),
        out_shape=jax.ShapeDtypeStruct((N, Ho, Wo, Cout), jnp.bfloat16),
        grid_spec=pltpu.PrefetchScalarGridSpec(
            num_scalar_prefetch=0,
            grid=(N, nb),
            in_specs=[
                pl.BlockSpec((1, 1, rw, Wp, KL), lambda n, i: (n, i, 0, 0, 0)),
                pl.BlockSpec((n_ky, 2, KL, 2 * Cout), lambda n, i: (0, 0, 0, 0)),
                pl.BlockSpec((1, 2 * Cout), lambda n, i: (0, 0)),
                pl.BlockSpec((1, 2 * Cout), lambda n, i: (0, 0)),
            ],
            out_specs=pl.BlockSpec((1, R // 2, Wo, Cout),
                                   lambda n, i: (n, i, 0, 0)),
        ),
        compiler_params=pltpu.CompilerParams(
            dimension_semantics=("parallel", "parallel"),
            vmem_limit_bytes=40 * 1024 * 1024),
    )(slab, wpack, layer["scale"], layer["shift"])


# ----------------------------- fc1: streamed linear ------------------------------

def _make_fc_kernel(relu):
    def kernel(x_ref, w_ref, b_ref, o_ref, acc_ref):
        k = pl.program_id(1)

        @pl.when(k == 0)
        def _():
            acc_ref[...] = jnp.zeros_like(acc_ref)

        acc_ref[...] += jnp.dot(x_ref[...], w_ref[...],
                                preferred_element_type=jnp.float32)

        @pl.when(k == pl.num_programs(1) - 1)
        def _():
            y = acc_ref[...] + b_ref[...]
            if relu:
                y = jnp.maximum(y, 0.0)
            o_ref[...] = y.astype(o_ref.dtype)

    return kernel


def linear(x, w, b, *, relu, tk, tf, out_dtype=jnp.bfloat16):
    Nb, K = x.shape
    K2, F = w.shape
    assert K == K2 and K % tk == 0 and F % tf == 0
    return pl.pallas_call(
        _make_fc_kernel(relu),
        out_shape=jax.ShapeDtypeStruct((Nb, F), out_dtype),
        grid_spec=pltpu.PrefetchScalarGridSpec(
            num_scalar_prefetch=0,
            grid=(F // tf, K // tk),                    # reduction axis last
            in_specs=[
                pl.BlockSpec((Nb, tk), lambda f, k: (0, k)),
                pl.BlockSpec((tk, tf), lambda f, k: (k, f)),
                pl.BlockSpec((1, tf), lambda f, k: (0, f)),
            ],
            out_specs=pl.BlockSpec((Nb, tf), lambda f, k: (0, f)),
            scratch_shapes=[pltpu.VMEM((Nb, tf), jnp.float32)],
        ),
        compiler_params=pltpu.CompilerParams(
            dimension_semantics=("parallel", "arbitrary"),
            vmem_limit_bytes=28 * 1024 * 1024),
    )(x, w, b)


# ----------------------------- fused fc2 (+ReLU) + fc3 ---------------------------

def _fc_tail_kernel(x_ref, w2_ref, b2_ref, w3_ref, b3_ref, o_ref):
    h = jnp.dot(x_ref[...], w2_ref[...], preferred_element_type=jnp.float32)
    h = jnp.maximum(h + b2_ref[...], 0.0).astype(x_ref.dtype)
    y = jnp.dot(h, w3_ref[...], preferred_element_type=jnp.float32)
    o_ref[...] = (y + b3_ref[...]).astype(o_ref.dtype)


def fc_tail(x, fc2, fc3):
    Nb, K = x.shape
    F2 = fc2["w"].shape[1]
    F3 = fc3["w"].shape[1]
    return pl.pallas_call(
        _fc_tail_kernel,
        out_shape=jax.ShapeDtypeStruct((Nb, F3), jnp.float32),
        grid_spec=pltpu.PrefetchScalarGridSpec(
            num_scalar_prefetch=0,
            grid=(1,),
            in_specs=[
                pl.BlockSpec((Nb, K), lambda i: (0, 0)),
                pl.BlockSpec((K, F2), lambda i: (0, 0)),
                pl.BlockSpec((1, F2), lambda i: (0, 0)),
                pl.BlockSpec((F2, F3), lambda i: (0, 0)),
                pl.BlockSpec((1, F3), lambda i: (0, 0)),
            ],
            out_specs=pl.BlockSpec((Nb, F3), lambda i: (0, 0)),
        ),
        compiler_params=pltpu.CompilerParams(
            dimension_semantics=("arbitrary",)),
    )(x, fc2["w"], fc2["b"], fc3["w"], fc3["b"])


# ----------------------------- parameters ----------------------------------------

def _init_conv_block(k, cin, cout):
    ks = jax.random.split(k, 6)
    return dict(
        w=jax.random.normal(ks[0], (cout, cin, 3, 3), jnp.float32)
          * (1.0 / (3.0 * (cin ** 0.5))),
        b=0.05 * jax.random.normal(ks[1], (cout,), jnp.float32),
        gamma=1.0 + 0.1 * jax.random.normal(ks[2], (cout,), jnp.float32),
        beta=0.1 * jax.random.normal(ks[3], (cout,), jnp.float32),
        mean=0.1 * jax.random.normal(ks[4], (cout,), jnp.float32),
        var=jax.random.uniform(ks[5], (cout,), jnp.float32, 0.5, 1.5),
    )


def _init_fc_block(k, fin, fout):
    k1, k2 = jax.random.split(k)
    return dict(
        w=jax.random.normal(k1, (fin, fout), jnp.float32) * (1.0 / (fin ** 0.5)),
        b=0.05 * jax.random.normal(k2, (fout,), jnp.float32),
    )


def init_params(key):
    keys = jax.random.split(key, 7)
    return dict(
        c1=_init_conv_block(keys[0], 3, 32),
        c2=_init_conv_block(keys[1], 32, 64),
        c3=_init_conv_block(keys[2], 64, 128),
        c4=_init_conv_block(keys[3], 128, 256),
        fc1=_init_fc_block(keys[4], 256 * 32 * 32, 512),
        fc2=_init_fc_block(keys[5], 512, 128),
        fc3=_init_fc_block(keys[6], 128, 2),
    )


def _prep_conv(p, *, fold_ky=False, eps=1e-5):
    w = p["w"]                                    # (Cout, Cin, ky, kx) PyTorch layout
    cout, cin = w.shape[0], w.shape[1]
    wt = jnp.transpose(w, (2, 3, 1, 0))           # (ky, kx, Cin, Cout)
    z = jnp.zeros((cin, cout), w.dtype)

    def eo(even, odd):                            # (Cin, 2*Cout) = [even col | odd col]
        return jnp.concatenate([even, odd], axis=-1)

    # Per ky: weights applied to the left / right column pair, with the even
    # and odd conv columns of each 2x2 pooling window packed along the output.
    WL = jnp.stack([jnp.stack([eo(wt[ky, 0], z),
                               eo(wt[ky, 1], wt[ky, 0])], axis=0)
                    for ky in range(3)], axis=0)   # (3, 2kxp, Cin, 2Cout)
    WR = jnp.stack([jnp.stack([eo(wt[ky, 2], wt[ky, 1]),
                               eo(z, wt[ky, 2])], axis=0)
                    for ky in range(3)], axis=0)

    if fold_ky:                                   # lane order (kxp, ky, ci): K = 6*Cin
        wl = WL.transpose(1, 0, 2, 3).reshape(1, 6 * cin, 2 * cout)
        wr = WR.transpose(1, 0, 2, 3).reshape(1, 6 * cin, 2 * cout)
    else:                                         # lane order (kxp, ci): K = 2*Cin, 3 ky views
        wl = WL.reshape(3, 2 * cin, 2 * cout)
        wr = WR.reshape(3, 2 * cin, 2 * cout)
    wpack = jnp.stack([wl, wr], axis=1)           # (n_ky, 2, K, 2*Cout)

    scale = p["gamma"] / jnp.sqrt(p["var"] + eps)
    shift = p["beta"] + scale * (p["b"] - p["mean"])
    sc2 = jnp.concatenate([scale, scale]).reshape(1, 2 * cout)
    sh2 = jnp.concatenate([shift, shift]).reshape(1, 2 * cout)
    return dict(w=wpack.astype(jnp.bfloat16),
                scale=sc2.astype(jnp.float32),
                shift=sh2.astype(jnp.float32))


def _prep_fc(p, *, nhwc_perm=None):
    w = p["w"]
    if nhwc_perm is not None:                     # NCHW-flatten -> NHWC-flatten rows
        c, h, ww = nhwc_perm
        w = w.reshape(c, h, ww, w.shape[1]).transpose(1, 2, 0, 3)
        w = w.reshape(c * h * ww, -1)
    return dict(w=w.astype(jnp.bfloat16),
                b=p["b"].reshape(1, -1).astype(jnp.float32))


def prepare_params(params):
    return dict(
        c1=_prep_conv(params["c1"], fold_ky=True),
        c2=_prep_conv(params["c2"]),
        c3=_prep_conv(params["c3"]),
        c4=_prep_conv(params["c4"]),
        fc1=_prep_fc(params["fc1"], nhwc_perm=(256, 32, 32)),
        fc2=_prep_fc(params["fc2"]),
        fc3=_prep_fc(params["fc3"]),
    )


# ----------------------------- forward --------------------------------------------

def stroke_detection_forward(kp, x_nchw):
    x = jnp.transpose(x_nchw, (0, 2, 3, 1)).astype(jnp.bfloat16)   # NCHW -> NHWC bf16
    x = conv_bn_relu_pool(x, kp["c1"], rows=32)     # 512 -> 256
    x = conv_bn_relu_pool(x, kp["c2"], rows=32)     # 256 -> 128
    x = conv_bn_relu_pool(x, kp["c3"], rows=32)     # 128 -> 64
    x = conv_bn_relu_pool(x, kp["c4"], rows=32)     #  64 -> 32
    n = x.shape[0]
    x = x.reshape(n, -1)     # NHWC flatten; fc1 rows pre-permuted to match PyTorch
    # dropout1 / dropout2: identity in inference mode.
    # TODO(synk): training-mode dropout (random masking + 1/(1-p) scaling) not implemented.
    x = linear(x, kp["fc1"]["w"], kp["fc1"]["b"], relu=True, tk=16384, tf=256)
    x = fc_tail(x, kp["fc2"], kp["fc3"])            # fused fc2 (+ReLU) + fc3
    return x


# ----------------------------- references for self-check --------------------------

def _conv_block_reference(x_nhwc, p, eps=1e-5):
    w_hwio = jnp.transpose(p["w"], (2, 3, 1, 0))
    y = jax.lax.conv_general_dilated(
        x_nhwc, w_hwio, window_strides=(1, 1), padding=((1, 1), (1, 1)),
        dimension_numbers=("NHWC", "HWIO", "NHWC"),
        precision=jax.lax.Precision.HIGHEST)
    y = y + p["b"]
    y = (y - p["mean"]) * (p["gamma"] / jnp.sqrt(p["var"] + eps)) + p["beta"]
    y = jnp.maximum(y, 0.0)
    return jax.lax.reduce_window(y, -jnp.inf, jax.lax.max,
                                 (1, 2, 2, 1), (1, 2, 2, 1), "VALID")


if __name__ == "__main__":
    key = jax.random.PRNGKey(0)
    pkey, xkey = jax.random.split(key)
    params = init_params(pkey)
    kparams = prepare_params(params)

    # --- small self-checks of the fused kernels vs plain-XLA references ---
    ck1, ck2, ck3 = jax.random.split(jax.random.PRNGKey(1), 3)
    hp = jax.lax.Precision.HIGHEST

    # conv1 path (ky folded into lanes)
    xs = jax.random.normal(ck1, (1, 64, 64, 3), jnp.float32)
    got = conv_bn_relu_pool(xs.astype(jnp.bfloat16), kparams["c1"],
                            rows=16).astype(jnp.float32)
    want = _conv_block_reference(xs, params["c1"])
    assert got.shape == want.shape
    assert float(jnp.max(jnp.abs(got - want))) < 0.3      # bf16 tolerance

    # conv2 path (halo'd row windows; 2 row blocks exercise the halo handling)
    xs = jax.random.normal(ck2, (1, 32, 32, 32), jnp.float32)
    got = conv_bn_relu_pool(xs.astype(jnp.bfloat16), kparams["c2"],
                            rows=16).astype(jnp.float32)
    want = _conv_block_reference(xs, params["c2"])
    assert got.shape == want.shape
    assert float(jnp.max(jnp.abs(got - want))) < 0.3      # bf16 tolerance

    # fc1-style streaming linear
    xf = jax.random.normal(ck3, (2, 512), jnp.float32)
    got = linear(xf.astype(jnp.bfloat16), kparams["fc2"]["w"], kparams["fc2"]["b"],
                 relu=True, tk=256, tf=128).astype(jnp.float32)
    want_h = jnp.maximum(
        jnp.dot(xf, params["fc2"]["w"], precision=hp) + params["fc2"]["b"], 0.0)
    assert float(jnp.max(jnp.abs(got - want_h))) < 0.1    # bf16 tolerance

    # fused fc2+fc3 tail
    got = fc_tail(xf.astype(jnp.bfloat16), kparams["fc2"], kparams["fc3"])
    want = jnp.dot(want_h, params["fc3"]["w"], precision=hp) + params["fc3"]["b"]
    assert float(jnp.max(jnp.abs(got - want))) < 0.1      # bf16 tolerance

    del params   # keep only the bf16 kernel-ready parameters for the forward

    # fc1.in_features = 256*32*32 with 4 maxpools forces a 512x512 spatial input.
    x = jax.random.normal(xkey, (2, 3, 512, 512), jnp.float32)
    fwd = jax.jit(stroke_detection_forward)
    out = jax.block_until_ready(fwd(kparams, x))

    assert out.shape == (2, 2), out.shape
    assert bool(jnp.all(jnp.isfinite(out)))
    print("KERNEL_OK")
</pallas_src>

<mosaic_0001>
module attributes {stable_mosaic.version = 11 : i64} {
  func.func @kernel(%arg0: i32, %arg1: i32, %arg2: memref<1x1x16x33x18xbf16, #tpu.memory_space<vmem>>, %arg3: memref<1x2x18x64xbf16, #tpu.memory_space<vmem>>, %arg4: memref<1x64xf32, #tpu.memory_space<vmem>>, %arg5: memref<1x64xf32, #tpu.memory_space<vmem>>, %arg6: memref<1x8x32x32xbf16, #tpu.memory_space<vmem>>) attributes {dimension_semantics = [#tpu.dimension_semantics<parallel>, #tpu.dimension_semantics<parallel>], iteration_bounds = array<i64: 1, 4>, scalar_prefetch = 0 : i64, scratch_operands = 0 : i64, tpu.core_type = #tpu.core_type<tc>, window_params = [{transform_indices = @transform_0, window_bounds = array<i64: 1, 1, 16, 33, 18>}, {pipeline_mode = #tpu.pipeline_mode<synchronous>, transform_indices = @transform_1, window_bounds = array<i64: 1, 2, 18, 64>}, {pipeline_mode = #tpu.pipeline_mode<synchronous>, transform_indices = @transform_2, window_bounds = array<i64: 1, 64>}, {pipeline_mode = #tpu.pipeline_mode<synchronous>, transform_indices = @transform_3, window_bounds = array<i64: 1, 64>}, {transform_indices = @transform_4, window_bounds = array<i64: 1, 8, 32, 32>}]} {
    %c0 = arith.constant 0 : index
    %c0_0 = arith.constant 0 : index
    %c0_1 = arith.constant 0 : index
    %c0_2 = arith.constant 0 : index
    %c0_3 = arith.constant 0 : index
    %0 = vector.load %arg2[%c0, %c0_0, %c0_1, %c0_2, %c0_3] : memref<1x1x16x33x18xbf16, #tpu.memory_space<vmem>>, vector<1x1x16x33x18xbf16>
    %1 = vector.shape_cast %0 : vector<1x1x16x33x18xbf16> to vector<16x33x18xbf16>
    %2 = vector.extract_strided_slice %1 {offsets = [0, 0, 0], sizes = [16, 32, 18], strides = [1, 1, 1]} : vector<16x33x18xbf16> to vector<16x32x18xbf16>
    %3 = vector.extract_strided_slice %1 {offsets = [0, 1, 0], sizes = [16, 32, 18], strides = [1, 1, 1]} : vector<16x33x18xbf16> to vector<16x32x18xbf16>
    %4 = vector.shape_cast %2 : vector<16x32x18xbf16> to vector<512x18xbf16>
    %5 = vector.shape_cast %3 : vector<16x32x18xbf16> to vector<512x18xbf16>
    %c0_4 = arith.constant 0 : index
    %c0_5 = arith.constant 0 : index
    %c0_6 = arith.constant 0 : index
    %c0_7 = arith.constant 0 : index
    %6 = vector.load %arg3[%c0_4, %c0_5, %c0_6, %c0_7] : memref<1x2x18x64xbf16, #tpu.memory_space<vmem>>, vector<1x1x18x64xbf16>
    %7 = vector.shape_cast %6 : vector<1x1x18x64xbf16> to vector<18x64xbf16>
    %cst = arith.constant dense<0.000000e+00> : vector<512x64xf32>
    %8 = tpu.matmul %4, %7, %cst {dimension_numbers = #tpu.dot_dimension_numbers<[1], [0], [0], [1], [0, 0, 1, 1], [], []>} : vector<512x18xbf16>, vector<18x64xbf16>, vector<512x64xf32> -> vector<512x64xf32>
    %c0_8 = arith.constant 0 : index
    %c1 = arith.constant 1 : index
    %c0_9 = arith.constant 0 : index
    %c0_10 = arith.constant 0 : index
    %9 = vector.load %arg3[%c0_8, %c1, %c0_9, %c0_10] : memref<1x2x18x64xbf16, #tpu.memory_space<vmem>>, vector<1x1x18x64xbf16>
    %10 = vector.shape_cast %9 : vector<1x1x18x64xbf16> to vector<18x64xbf16>
    %cst_11 = arith.constant dense<0.000000e+00> : vector<512x64xf32>
    %11 = tpu.matmul %5, %10, %cst_11 {dimension_numbers = #tpu.dot_dimension_numbers<[1], [0], [0], [1], [0, 0, 1, 1], [], []>} : vector<512x18xbf16>, vector<18x64xbf16>, vector<512x64xf32> -> vector<512x64xf32>
    %12 = arith.addf %8, %11 : vector<512x64xf32>
    %c0_12 = arith.constant 0 : index
    %c0_13 = arith.constant 0 : index
    %13 = vector.load %arg4[%c0_12, %c0_13] : memref<1x64xf32, #tpu.memory_space<vmem>>, vector<1x64xf32>
    %14 = vector.broadcast %13 : vector<1x64xf32> to vector<512x64xf32>
    %15 = arith.mulf %12, %14 : vector<512x64xf32>
    %c0_14 = arith.constant 0 : index
    %c0_15 = arith.constant 0 : index
    %16 = vector.load %arg5[%c0_14, %c0_15] : memref<1x64xf32, #tpu.memory_space<vmem>>, vector<1x64xf32>
    %17 = vector.broadcast %16 : vector<1x64xf32> to vector<512x64xf32>
    %18 = arith.addf %15, %17 : vector<512x64xf32>
    %19 = vector.extract_strided_slice %18 {offsets = [0, 0], sizes = [512, 32], strides = [1, 1]} : vector<512x64xf32> to vector<512x32xf32>
    %20 = vector.extract_strided_slice %18 {offsets = [0, 32], sizes = [512, 32], strides = [1, 1]} : vector<512x64xf32> to vector<512x32xf32>
    %21 = arith.maximumf %19, %20 : vector<512x32xf32>
    %22 = vector.shape_cast %21 : vector<512x32xf32> to vector<8x2x32x32xf32>
    %23 = vector.extract_strided_slice %22 {offsets = [0, 0, 0, 0], sizes = [8, 1, 32, 32], strides = [1, 1, 1, 1]} : vector<8x2x32x32xf32> to vector<8x1x32x32xf32>
    %24 = vector.shape_cast %23 : vector<8x1x32x32xf32> to vector<8x32x32xf32>
    %25 = vector.extract_strided_slice %22 {offsets = [0, 1, 0, 0], sizes = [8, 1, 32, 32], strides = [1, 1, 1, 1]} : vector<8x2x32x32xf32> to vector<8x1x32x32xf32>
    %26 = vector.shape_cast %25 : vector<8x1x32x32xf32> to vector<8x32x32xf32>
    %27 = arith.maximumf %24, %26 : vector<8x32x32xf32>
    %cst_16 = arith.constant 0.000000e+00 : f32
    %28 = vector.broadcast %cst_16 : f32 to vector<8x32x32xf32>
    %29 = arith.maximumf %27, %28 : vector<8x32x32xf32>
    %30 = arith.truncf %29 : vector<8x32x32xf32> to vector<8x32x32xbf16>
    %c0_17 = arith.constant 0 : index
    %c0_18 = arith.constant 0 : index
    %c0_19 = arith.constant 0 : index
    %c0_20 = arith.constant 0 : index
    %31 = vector.load %arg6[%c0_17, %c0_18, %c0_19, %c0_20] : memref<1x8x32x32xbf16, #tpu.memory_space<vmem>>, vector<1x8x32x32xbf16>
    %32 = vector.shape_cast %31 : vector<1x8x32x32xbf16> to vector<8x32x32xbf16>
    %33 = vector.shape_cast %30 : vector<8x32x32xbf16> to vector<1x8x32x32xbf16>
    tpu.vector_store %arg6[%c0_17, %c0_18, %c0_19, %c0_20], %33 {strides = array<i32>} : memref<1x8x32x32xbf16, #tpu.memory_space<vmem>>, vector<1x8x32x32xbf16>,
    return
  }
  func.func @transform_0(%arg0: i32, %arg1: i32) -> (i32, i32, i32, i32, i32) {
    %c0_i32 = arith.constant 0 : i32
    %c0_i32_0 = arith.constant 0 : i32
    %c0_i32_1 = arith.constant 0 : i32
    %c0_i32_2 = arith.constant 0 : i32
    return %arg0, %arg1, %c0_i32, %c0_i32_0, %c0_i32_1 : i32, i32, i32, i32, i32
  }
  func.func @transform_1(%arg0: i32, %arg1: i32) -> (i32, i32, i32, i32) {
    %c0_i32 = arith.constant 0 : i32
    %c0_i32_0 = arith.constant 0 : i32
    %c0_i32_1 = arith.constant 0 : i32
    %c0_i32_2 = arith.constant 0 : i32
    %c0_i32_3 = arith.constant 0 : i32
    return %c0_i32, %c0_i32_0, %c0_i32_1, %c0_i32_2 : i32, i32, i32, i32
  }
  func.func @transform_2(%arg0: i32, %arg1: i32) -> (i32, i32) {
    %c0_i32 = arith.constant 0 : i32
    %c0_i32_0 = arith.constant 0 : i32
    %c0_i32_1 = arith.constant 0 : i32
    return %c0_i32, %c0_i32_0 : i32, i32
  }
  func.func @transform_3(%arg0: i32, %arg1: i32) -> (i32, i32) {
    %c0_i32 = arith.constant 0 : i32
    %c0_i32_0 = arith.constant 0 : i32
    %c0_i32_1 = arith.constant 0 : i32
    return %c0_i32, %c0_i32_0 : i32, i32
  }
  func.func @transform_4(%arg0: i32, %arg1: i32) -> (i32, i32, i32, i32) {
    %c0_i32 = arith.constant 0 : i32
    %c0_i32_0 = arith.constant 0 : i32
    %c0_i32_1 = arith.constant 0 : i32
    return %arg0, %arg1, %c0_i32, %c0_i32_0 : i32, i32, i32, i32
  }
}

</mosaic_0001>

<bundles_post_ra>
// kernel: tpu_custom_call.1
= control target key start
LH: loop header
LB: loop body
LE: loop exit
PB: predicated region body
PF: predicated region fallthrough
CT: control target
= control target key end

     0   :  { %9 = vsyncpa [#allocation3], 0  ;;  %s4612_s0 = inlined_call_operand.vmem [shape: bf16[1,4,16,33,18], index: 0, kind: input, shape index: {}]   ;;  %s4613_s1 = inlined_call_operand.vmem [shape: bf16[1,2,18,64], index: 1, kind: input, shape index: {}]   ;;  %s4614_s2 = inlined_call_operand.vmem [shape: f32[1,64], index: 2, kind: input, shape index: {}]   ;;  %s4615_s3 = inlined_call_operand.vmem [shape: f32[1,64], index: 3, kind: input, shape index: {}]   ;;  %s4616_s4 = inlined_call_operand.hbm [shape: bf16[1,32,32,32], index: 4, kind: output, shape index: {}]  }
   0x1   :  { %11 = vsyncpa [#allocation3 + $0x1], 0  ;;  %s3708_s15 = smov 0   ;;  %s3710_s16 = smov 0  }
   0x2   :  { %s3712_s17 = smov 0   ;;  %s3714_s18 = smov 0  }
   0x3   :  { %s3716_s19 = smov 0   ;;  %s3718_s20 = smov 0  }
   0x4 LB: > { %s2858_s21 = sadd.s32 4294967295, %s3677_s20   ;;  %s2859_s22 = sadd.s32 4294967294, %s3677_s20   ;;  %s3677_s20 = sphi %s3718_s20, %s17_s20   ;;  %s3673_s19 = sphi %s3716_s19, %s4679_s19   ;;  %s3669_s18 = sphi %s3714_s18, %s4678_s18   ;;  %s3665_s17 = sphi %s3712_s17, %s4677_s17   ;;  %s3661_s16 = sphi %s3710_s16, %s4676_s16   ;;  %s3657_s15 = sphi %s3708_s15, %s4675_s15  }
   0x5   : > { %s26_s23 = sadd.s32 1, %s3673_s19  ;;  %s129_s24 = sadd.s32 1, %s3665_s17 }
   0x6   : > { %p27_p0 = scmp.ge.s32.totalorder %s26_s23, 4  ;;  %p139_p1 = scmp.ne.s32.totalorder %s3665_s17, %s3661_s16 }
   0x7   : > { %p140_p2 = scmp.eq.s32.totalorder %s2858_s21, 3  ;;  %p145_p3 = scmp.ne.s32.totalorder %s3661_s16, %s3657_s15 }
   0x8   : > { %s4681_s23 = smov (%p27_p0, %s26_s23), 0  ;;  %p146_p5 = scmp.eq.s32.totalorder %s2859_s22, 3 }
   0x9   : > { %p3748_p4 = por %p140_p2, %p139_p1  ;;  %s125_s26 = ssub.s32 %s3673_s19, %s4681_s23 }
   0xa   : > { %p2862_p6 = scmp.ge.s32.totalorder %s3677_s20, 1  ;;  %p127_p7 = scmp.eq.s32.totalorder %s125_s26, 0 }
   0xb   : > { %p3755_p8 = por %p146_p5, %p145_p3  ;;  %p185_p9 = scmp.lt.s32.totalorder %s3677_s20, 5 }
   0xc   : > { %s3761_s28 = scalar_select %p127_p7, %s3665_s17, %s129_s24  }
   0xd   : > { %p186_p10 = pnand %p2862_p6, %p185_p9 }
   0xf   : > { %189 = sbr.rel (%p186_p10) target bundleno = 534 (0x216), region = 36 }
  0x16   : > { %v3563_v0 = vld [vmem:[%s4613_s1] sm:$0xff]   ;;  %vm1222_vm0 = vcmask 1040384   ;;  %v3564_v1 = vld [vmem:[%s4613_s1 + $0xc] sm:$0xff]   ;;  %p217_p11 = scmp.lt.s32.totalorder %s3669_s18, 3  ;;  %vm1125_vm1 = vcmask 146432   ;;  %s3679_s30 = smov 96  }
  0x17   : > { %3210 = vmatprep.subr.bf16.mxu0 %v3563_v0  ;;  %v3565_v2 = vld [vmem:[%s4613_s1 + $0x8] ss:$0 sps:$4 sm:$0x11]   ;;  %3142 = vmatprep.subr.bf16.mxu1 %v3564_v1  ;;  %v3566_v3 = vld [vmem:[%s4613_s1 + $0x14] ss:$0 sps:$4 sm:$0x11]  }
  0x18   : > { %3211 = vmatpush3.bf16.msra.mxu0 %v3563_v0  ;;  %s218_s11 = scalar_select %p217_p11, %s3669_s18, 3  ;;  %3143 = vmatpush3.bf16.msra.mxu1 %v3564_v1  ;;  %v1781_v4 = vsel %vm1222_vm0, %v3565_v2, 0  ;;  %v1224_v5 = vsel %vm1222_vm0, %v3566_v3, 0  ;;  %vm306_vm2 = vsmask.f32 3328  ;;  %vm2726_vm5 = vcmask 257024  }
  0x19   : > { %3343 = vmatprep.subr.msk.bf16.mxu0 %vm1222_vm0, %v3565_v2  ;;  %3342 = vmatprep.subr.msk.bf16.mxu1 %vm1222_vm0, %v3566_v3  ;;  %vm307_vm3 = vsmask.f32 7440  ;;  %s212_s5 = sand.u32 1, %s3661_s16   ;;  %s3073_s8 = sshll.u32 %s3669_s18, 11 }
  0x1a   : > { %s3344_s12 = smul.u32 320, %s218_s11  ;;  %vm3793_vm4 = vmor %vm306_vm2, %vm307_vm3  ;;  %s2863_s6 = sshll.u32 %s212_s5, 7 }
  0x1b   : > { %s4433_s7 = scalar_lea.vmem [#allocation2], %s2863_s6  ;;  %s4566_s18 = scalar_lea.sflag [#allocation3], %s212_s5 }
  0x1c   : > { %3213 = vmatpush3.bf16.msra.mxu0 %v1781_v4  ;;  %s3780_s21 = scalar_lea.vmem %s4612_s0, %s3344_s12  ;;  %3145 = vmatpush3.bf16.msra.mxu1 %v1224_v5  ;;  %s2776_s9 = sshll.u32 %s4433_s7, 4  ;;  %s4554_s9 = int_to_ptr.vmem [resolvable:$true] %s2776_s9 }
  0x1d   : > { %v226_v6 = vld [vmem:[%s3780_s21] sm:$0xf]  ;;  %v227_v7 = vld [vmem:[%s3780_s21 + $0x4] sm:$0xf]  ;;  %v228_v8 = vld [vmem:[%s3780_s21 + $0x8] sm:$0xf]  ;;  %s4552_s12 = scalar_lea.hbm %s4616_s4, %s3073_s8 }
  0x1e   : > { %v310_v9 = vshrl.u32 %v226_v6, 16  ;;  %v313_v10 = vshll.u32 %v226_v6, 16  ;;  %v319_v11 = vshll.u32 %v227_v7, 16  ;;  %v323_v12 = vshrl.u32 %v227_v7, 16  ;;  %v229_v13 = vld [vmem:[%s3780_s21 + $0xc] sm:$0xf] }
  0x1f   : > { %v2934_v14 = vcombine.low %v226_v6, %v227_v7  ;;  %v339_v15 = vshll.u32 %v229_v13, 16  ;;  %v343_v16 = vshrl.u32 %v229_v13, 16  ;;  %v2935_v17 = vcombine.low %v228_v8, %v229_v13  ;;  %v230_v18 = vld [vmem:[%s3780_s21 + $0x10] sm:$0x1]  ;;  %v231_v19 = vld [vmem:[%s3780_s21 + $0x14] sm:$0xf] }
  0x20   : > { %v312_v20 = vrot.slane %v310_v9, 4  ;;  %v315_v21 = vrot.slane %v313_v10, 5  ;;  %v321_v22 = vrot.slane %v319_v11, 5  ;;  %v325_v23 = vrot.slane %v323_v12, 4  ;;  %v232_v31 = vld [vmem:[%s3780_s21 + $0x18] sm:$0xf] }
  0x21   : > { %3214 = vmatprep.mubr.msk.bf16.mxu0 %vm1125_vm1, %v2934_v14  ;;  %v341_v24 = vrot.slane %v339_v15, 5  ;;  %v345_v25 = vrot.slane %v343_v16, 4  ;;  %v329_v26 = vshll.u32 %v228_v8, 16  ;;  %v333_v27 = vshrl.u32 %v228_v8, 16  ;;  %v233_v42 = vld [vmem:[%s3780_s21 + $0x1c] sm:$0xf] }
  0x22   : > { %3215 = vmatmul.mubr.msk.bf16.vlgmr.msra.gmra.mrb[0].mxu0 %vm1125_vm1, %v2935_v17  ;;  %v316_v28 = vor.u32 %v315_v21, %v312_v20  ;;  %v326_v29 = vor.u32 %v325_v23, %v321_v22  ;;  %v349_v30 = vshll.u32 %v230_v18, 16  ;;  %v354_v32 = vshrl.u32 %v231_v19, 16  ;;  %v234_v47 = vld [vmem:[%s3780_s21 + $0x20] sm:$0xf]  ;;  %v235_v60 = vld [vmem:[%s3780_s21 + $0x24] sm:$0x1] }
  0x23   : > { %v331_v34 = vrot.slane %v329_v26, 5  ;;  %v335_v35 = vrot.slane %v333_v27, 4  ;;  %v346_v36 = vor.u32 %v345_v25, %v341_v24  ;;  %v357_v37 = vshll.u32 %v231_v19, 16  ;;  %v236_v1 = vld [vmem:[%s3780_s21 + $0x28] sm:$0xf]  ;;  %s3599_s13 = scalar_lea.vmem %s4554_s9, 2048 }
  0x24   : > { %v317_v38 = vrot.slane %v316_v28, 4  ;;  %v327_v39 = vrot.slane %v326_v29, 4  ;;  %v351_v40 = vrot.slane %v349_v30, 5  ;;  %v356_v41 = vrot.slane %v354_v32, 4  ;;  %v237_v2 = vld [vmem:[%s3780_s21 + $0x2c] sm:$0xf]  ;;  %p3600_p12 = scmp.ne.s32.totalorder %s4554_s9, %s3599_s13 }
  0x25   : > { %v336_v43 = vor.u32 %v335_v35, %v331_v34  ;;  %v347_v44 = vrot.slane %v346_v36, 4  ;;  %v359_v45 = vrot.slane %v357_v37, 5  ;;  %v363_v46 = vshll.u32 %v232_v31, 16  ;;  %s3680_s14 = smov [#allocation2]  }
  0x26   : > { %v322_v48 = vsel %vm3793_vm4, %v317_v38, %v321_v22  ;;  %v332_v49 = vsel %vm3793_vm4, %v327_v39, %v331_v34  ;;  %v367_v50 = vshrl.u32 %v232_v31, 16  ;;  %v2936_v51 = vcombine.low %v231_v19, %v232_v31  ;;  %v238_v19 = vld [vmem:[%s3780_s21 + $0x30] sm:$0xf]  ;;  %v240_v34 = vld [vmem:[%s3780_s21 + $0x38] sm:$0x1]  ;;  %p3601_p13 = pnand %p3600_p12, %p3748_p4 }
  0x27   : > { %v337_v52 = vrot.slane %v336_v43, 4  ;;  %v2868_v53 = vcombine.low %v322_v48, %v332_v49  ;;  %v352_v54 = vsel %vm3793_vm4, %v347_v44, %v351_v40  ;;  %v365_v55 = vrot.slane %v363_v46, 5  ;;  %v241_v39 = vld [vmem:[%s3780_s21 + $0x3c] sm:$0xf]  ;;  %v242_v44 = vld [vmem:[%s3780_s21 + $0x40] sm:$0xf] }
  0x28   : > { %v369_v56 = vrot.slane %v367_v50, 4  ;;  %3218 = vmatprep.mubr.msk.bf16.mxu0 %vm1125_vm1, %v2936_v51  ;;  %v373_v57 = vshll.u32 %v233_v42, 16  ;;  %v377_v58 = vshrl.u32 %v233_v42, 16  ;;  %v383_v59 = vshll.u32 %v234_v47, 16  ;;  %p3602_p0 = pneg %p3601_p13 }
  0x29   : > { %3146 = vmatprep.mubr.msk.bf16.mxu1 %vm1125_vm1, %v2868_v53  ;;  %v342_v61 = vsel %vm3793_vm4, %v337_v52, %v341_v24  ;;  %v387_v62 = vshrl.u32 %v234_v47, 16  ;;  %v2937_v63 = vcombine.low %v233_v42, %v234_v47  ;;  %v360_v0 = vor.u32 %v359_v45, %v356_v41  ;;  %v239_v24 = vld [vmem:[%s3780_s21 + $0x34] sm:$0xf] }
  0x2a   : > { %v2869_v3 = vcombine.low %v342_v61, %v352_v54  ;;  %v375_v4 = vrot.slane %v373_v57, 5  ;;  %v379_v5 = vrot.slane %v377_v58, 4  ;;  %v385_v6 = vrot.slane %v383_v59, 5  ;;  %v243_v57 = vld [vmem:[%s3780_s21 + $0x44] sm:$0xf] }
  0x2b   : > { %v389_v7 = vrot.slane %v387_v62, 4  ;;  %3219 = vmatmul.mubr.msk.bf16.gmra.mrb[4].mxu0 %vm1125_vm1, %v2937_v63  ;;  %v361_v8 = vrot.slane %v360_v0, 4  ;;  %v370_v9 = vor.u32 %v369_v56, %v365_v55  ;;  %v393_v10 = vshll.u32 %v235_v60, 16  ;;  %v244_v62 = vld [vmem:[%s3780_s21 + $0x48] sm:$0xf] }
  0x2c   : > { %3147 = vmatmul.mubr.msk.bf16.vlgmr.msra.gmra.mrb[0].mxu1 %vm1125_vm1, %v2869_v3  ;;  %v380_v11 = vor.u32 %v379_v5, %v375_v4  ;;  %v398_v12 = vshrl.u32 %v236_v1, 16  ;;  %v401_v13 = vshll.u32 %v236_v1, 16  ;;  %v407_v14 = vshll.u32 %v237_v2, 16 }
  0x2d   : > { %v366_v15 = vsel %vm3793_vm4, %v361_v8, %v365_v55  ;;  %v371_v16 = vrot.slane %v370_v9, 4  ;;  %v390_v17 = vor.u32 %v389_v7, %v385_v6  ;;  %v395_v18 = vrot.slane %v393_v10, 5  ;;  %v245_v7 = vld [vmem:[%s3780_s21 + $0x4c] sm:$0x1] }
  0x2e   : > { %v381_v20 = vrot.slane %v380_v11, 4  ;;  %v400_v21 = vrot.slane %v398_v12, 4  ;;  %v403_v22 = vrot.slane %v401_v13, 5  ;;  %v409_v23 = vrot.slane %v407_v14, 5  ;;  %v246_v12 = vld [vmem:[%s3780_s21 + $0x50] sm:$0xf] }
  0x2f   : > { %v376_v25 = vsel %vm3793_vm4, %v371_v16, %v375_v4  ;;  %v391_v26 = vrot.slane %v390_v17, 4  ;;  %v411_v27 = vshrl.u32 %v237_v2, 16  ;;  %v2938_v28 = vcombine.low %v236_v1, %v237_v2  ;;  %v247_v17 = vld [vmem:[%s3780_s21 + $0x54] sm:$0xf] }
  0x30   : > { %v2870_v29 = vcombine.low %v366_v15, %v376_v25  ;;  %v386_v30 = vsel %vm3793_vm4, %v381_v20, %v385_v6  ;;  %v417_v31 = vshll.u32 %v238_v19, 16  ;;  %v421_v32 = vshrl.u32 %v238_v19, 16 }
  0x31   : > { %v396_v35 = vsel %vm3793_vm4, %v391_v26, %v395_v18  ;;  %v413_v36 = vrot.slane %v411_v27, 4  ;;  %3222 = vmatprep.mubr.msk.bf16.mxu0 %vm1125_vm1, %v2938_v28  ;;  %v427_v37 = vshll.u32 %v239_v24, 16  ;;  %v431_v38 = vshrl.u32 %v239_v24, 16 }
  0x32   : > { %3150 = vmatprep.mubr.msk.bf16.mxu1 %vm1125_vm1, %v2870_v29  ;;  %v2871_v40 = vcombine.low %v386_v30, %v396_v35  ;;  %v419_v41 = vrot.slane %v417_v31, 5  ;;  %v423_v42 = vrot.slane %v421_v32, 4  ;;  %v2939_v43 = vcombine.low %v238_v19, %v239_v24  ;;  %v248_v35 = vld [vmem:[%s3780_s21 + $0x58] sm:$0xf] }
  0x33   : > { %v429_v45 = vrot.slane %v427_v37, 5  ;;  %v433_v46 = vrot.slane %v431_v38, 4  ;;  %v404_v47 = vor.u32 %v403_v22, %v400_v21  ;;  %v414_v48 = vor.u32 %v413_v36, %v409_v23 }
  0x34   : > { %3151 = vmatmul.mubr.msk.bf16.gmra.mrb[4].mxu1 %vm1125_vm1, %v2871_v40  ;;  %3223 = vmatmul.mubr.msk.bf16.gmra.mrb[8].mxu0 %vm1125_vm1, %v2939_v43  ;;  %v424_v49 = vor.u32 %v423_v42, %v419_v41  ;;  %v437_v50 = vshll.u32 %v240_v34, 16  ;;  %v442_v51 = vshrl.u32 %v241_v39, 16  ;;  %v445_v52 = vshll.u32 %v241_v39, 16  ;;  %v249_v40 = vld [vmem:[%s3780_s21 + $0x5c] sm:$0xf] }
  0x35   : > { %v405_v53 = vrot.slane %v404_v47, 4  ;;  %v415_v54 = vrot.slane %v414_v48, 4  ;;  %v434_v55 = vor.u32 %v433_v46, %v429_v45  ;;  %v451_v56 = vshll.u32 %v242_v44, 16 }
  0x36   : > { %v425_v58 = vrot.slane %v424_v49, 4  ;;  %v439_v59 = vrot.slane %v437_v50, 5  ;;  %v444_v60 = vrot.slane %v442_v51, 4  ;;  %v447_v61 = vrot.slane %v445_v52, 5  ;;  %v250_v49 = vld [vmem:[%s3780_s21 + $0x60] sm:$0x1] }
  0x37   : > { %v410_v63 = vsel %vm3793_vm4, %v405_v53, %v409_v23  ;;  %v420_v0 = vsel %vm3793_vm4, %v415_v54, %v419_v41  ;;  %v435_v1 = vrot.slane %v434_v55, 4  ;;  %v453_v2 = vrot.slane %v451_v56, 5  ;;  %v251_v54 = vld [vmem:[%s3780_s21 + $0x64] sm:$0xf] }
  0x38   : > { %v2872_v3 = vcombine.low %v410_v63, %v420_v0  ;;  %v430_v4 = vsel %vm3793_vm4, %v425_v58, %v429_v45  ;;  %v455_v5 = vshrl.u32 %v242_v44, 16  ;;  %v2940_v6 = vcombine.low %v241_v39, %v242_v44 }
  0x39   : > { %v440_v8 = vsel %vm3793_vm4, %v435_v1, %v439_v59  ;;  %v461_v9 = vshll.u32 %v243_v57, 16  ;;  %v465_v10 = vshrl.u32 %v243_v57, 16  ;;  %v471_v11 = vshll.u32 %v244_v62, 16  ;;  %v252_v59 = vld [vmem:[%s3780_s21 + $0x68] sm:$0xf] }
  0x3a   : > { %3154 = vmatprep.mubr.msk.bf16.mxu1 %vm1125_vm1, %v2872_v3  ;;  %v2873_v13 = vcombine.low %v430_v4, %v440_v8  ;;  %v457_v14 = vrot.slane %v455_v5, 4  ;;  %3226 = vmatprep.mubr.msk.bf16.mxu0 %vm1125_vm1, %v2940_v6  ;;  %v475_v15 = vshrl.u32 %v244_v62, 16  ;;  %v2941_v16 = vcombine.low %v243_v57, %v244_v62  ;;  %v253_v8 = vld [vmem:[%s3780_s21 + $0x6c] sm:$0xf] }
  0x3b   : > { %v463_v18 = vrot.slane %v461_v9, 5  ;;  %v467_v19 = vrot.slane %v465_v10, 4  ;;  %v473_v20 = vrot.slane %v471_v11, 5  ;;  %v448_v21 = vor.u32 %v447_v61, %v444_v60 }
  0x3c   : > { %3155 = vmatmul.mubr.msk.bf16.gmra.mrb[8].mxu1 %vm1125_vm1, %v2873_v13  ;;  %v477_v22 = vrot.slane %v475_v15, 4  ;;  %3227 = vmatmul.mubr.msk.bf16.gmra.mrb[12].mxu0 %vm1125_vm1, %v2941_v16  ;;  %v458_v23 = vor.u32 %v457_v14, %v453_v2  ;;  %v481_v24 = vshll.u32 %v245_v7, 16  ;;  %v486_v25 = vshrl.u32 %v246_v12, 16  ;;  %v254_v13 = vld [vmem:[%s3780_s21 + $0x70] sm:$0xf] }
  0x3d   : > { %v449_v26 = vrot.slane %v448_v21, 4  ;;  %v468_v27 = vor.u32 %v467_v19, %v463_v18  ;;  %v489_v28 = vshll.u32 %v246_v12, 16  ;;  %v495_v29 = vshll.u32 %v247_v17, 16 }
  0x3e   : > { %v459_v30 = vrot.slane %v458_v23, 4  ;;  %v478_v31 = vor.u32 %v477_v22, %v473_v20  ;;  %v483_v32 = vrot.slane %v481_v24, 5  ;;  %v488_v34 = vrot.slane %v486_v25, 4  ;;  %v255_v22 = vld [vmem:[%s3780_s21 + $0x74] sm:$0x1] }
  0x3f   : > { %v454_v36 = vsel %vm3793_vm4, %v449_v26, %v453_v2  ;;  %v469_v37 = vrot.slane %v468_v27, 4  ;;  %v491_v38 = vrot.slane %v489_v28, 5  ;;  %v497_v39 = vrot.slane %v495_v29, 5  ;;  %v256_v27 = vld [vmem:[%s3780_s21 + $0x78] sm:$0xf] }
  0x40   : > { %v464_v41 = vsel %vm3793_vm4, %v459_v30, %v463_v18  ;;  %v479_v42 = vrot.slane %v478_v31, 4  ;;  %v499_v43 = vshrl.u32 %v247_v17, 16  ;;  %v2942_v44 = vcombine.low %v246_v12, %v247_v17 }
  0x41   : > { %v2874_v45 = vcombine.low %v454_v36, %v464_v41  ;;  %v474_v46 = vsel %vm3793_vm4, %v469_v37, %v473_v20  ;;  %v505_v47 = vshll.u32 %v248_v35, 16  ;;  %v509_v48 = vshrl.u32 %v248_v35, 16 }
  0x42   : > { %v484_v50 = vsel %vm3793_vm4, %v479_v42, %v483_v32  ;;  %v501_v51 = vrot.slane %v499_v43, 4  ;;  %3230 = vmatprep.mubr.msk.bf16.mxu0 %vm1125_vm1, %v2942_v44  ;;  %v515_v52 = vshll.u32 %v249_v40, 16  ;;  %v519_v53 = vshrl.u32 %v249_v40, 16  ;;  %v257_v32 = vld [vmem:[%s3780_s21 + $0x7c] sm:$0xf] }
  0x43   : > { %3158 = vmatprep.mubr.msk.bf16.mxu1 %vm1125_vm1, %v2874_v45  ;;  %v2875_v55 = vcombine.low %v474_v46, %v484_v50  ;;  %v507_v56 = vrot.slane %v505_v47, 5  ;;  %v511_v57 = vrot.slane %v509_v48, 4  ;;  %v2943_v58 = vcombine.low %v248_v35, %v249_v40  ;;  %v258_v50 = vld [vmem:[%s3780_s21 + $0x80] sm:$0xf] }
  0x44   : > { %v517_v60 = vrot.slane %v515_v52, 5  ;;  %v521_v61 = vrot.slane %v519_v53, 4  ;;  %v492_v62 = vor.u32 %v491_v38, %v488_v34  ;;  %v502_v63 = vor.u32 %v501_v51, %v497_v39 }
  0x45   : > { %3159 = vmatmul.mubr.msk.bf16.gmra.mrb[12].mxu1 %vm1125_vm1, %v2875_v55  ;;  %3231 = vmatmul.mubr.msk.bf16.gmra.mrb[16].mxu0 %vm1125_vm1, %v2943_v58  ;;  %v512_v0 = vor.u32 %v511_v57, %v507_v56  ;;  %v525_v1 = vshll.u32 %v250_v49, 16  ;;  %v530_v2 = vshrl.u32 %v251_v54, 16  ;;  %v533_v3 = vshll.u32 %v251_v54, 16  ;;  %v259_v55 = vld [vmem:[%s3780_s21 + $0x84] sm:$0xf] }
  0x46   : > { %v493_v4 = vrot.slane %v492_v62, 4  ;;  %v503_v5 = vrot.slane %v502_v63, 4  ;;  %v522_v6 = vor.u32 %v521_v61, %v517_v60  ;;  %v539_v7 = vshll.u32 %v252_v59, 16 }
  0x47   : > { %v513_v9 = vrot.slane %v512_v0, 4  ;;  %v527_v10 = vrot.slane %v525_v1, 5  ;;  %v532_v11 = vrot.slane %v530_v2, 4  ;;  %v535_v12 = vrot.slane %v533_v3, 5  ;;  %v260_v0 = vld [vmem:[%s3780_s21 + $0x88] sm:$0x1] }
  0x48   : > { %v498_v14 = vsel %vm3793_vm4, %v493_v4, %v497_v39  ;;  %v508_v15 = vsel %vm3793_vm4, %v503_v5, %v507_v56  ;;  %v523_v16 = vrot.slane %v522_v6, 4  ;;  %v541_v17 = vrot.slane %v539_v7, 5  ;;  %v261_v5 = vld [vmem:[%s3780_s21 + $0x8c] sm:$0xf] }
  0x49   : > { %v2876_v18 = vcombine.low %v498_v14, %v508_v15  ;;  %v518_v19 = vsel %vm3793_vm4, %v513_v9, %v517_v60  ;;  %v543_v20 = vshrl.u32 %v252_v59, 16  ;;  %v2944_v21 = vcombine.low %v251_v54, %v252_v59 }
  0x4a   : > { %v528_v23 = vsel %vm3793_vm4, %v523_v16, %v527_v10  ;;  %v549_v24 = vshll.u32 %v253_v8, 16  ;;  %v553_v25 = vshrl.u32 %v253_v8, 16  ;;  %v559_v26 = vshll.u32 %v254_v13, 16  ;;  %v262_v10 = vld [vmem:[%s3780_s21 + $0x90] sm:$0xf] }
  0x4b   : > { %3162 = vmatprep.mubr.msk.bf16.mxu1 %vm1125_vm1, %v2876_v18  ;;  %v2877_v28 = vcombine.low %v518_v19, %v528_v23  ;;  %v545_v29 = vrot.slane %v543_v20, 4  ;;  %3234 = vmatprep.mubr.msk.bf16.mxu0 %vm1125_vm1, %v2944_v21  ;;  %v563_v30 = vshrl.u32 %v254_v13, 16  ;;  %v2945_v31 = vcombine.low %v253_v8, %v254_v13  ;;  %v263_v23 = vld [vmem:[%s3780_s21 + $0x94] sm:$0xf] }
  0x4c   : > { %v551_v34 = vrot.slane %v549_v24, 5  ;;  %v555_v35 = vrot.slane %v553_v25, 4  ;;  %v561_v36 = vrot.slane %v559_v26, 5  ;;  %v536_v37 = vor.u32 %v535_v12, %v532_v11 }
  0x4d   : > { %3163 = vmatmul.mubr.msk.bf16.gmra.mrb[16].mxu1 %vm1125_vm1, %v2877_v28  ;;  %v565_v38 = vrot.slane %v563_v30, 4  ;;  %3235 = vmatmul.mubr.msk.bf16.gmra.mrb[20].mxu0 %vm1125_vm1, %v2945_v31  ;;  %v546_v39 = vor.u32 %v545_v29, %v541_v17  ;;  %v569_v40 = vshll.u32 %v255_v22, 16  ;;  %v574_v41 = vshrl.u32 %v256_v27, 16  ;;  %v264_v28 = vld [vmem:[%s3780_s21 + $0x98] sm:$0xf] }
  0x4e   : > { %v537_v42 = vrot.slane %v536_v37, 4  ;;  %v556_v43 = vor.u32 %v555_v35, %v551_v34  ;;  %v577_v44 = vshll.u32 %v256_v27, 16  ;;  %v583_v45 = vshll.u32 %v257_v32, 16 }
  0x4f   : > { %v547_v46 = vrot.slane %v546_v39, 4  ;;  %v566_v47 = vor.u32 %v565_v38, %v561_v36  ;;  %v571_v48 = vrot.slane %v569_v40, 5  ;;  %v576_v49 = vrot.slane %v574_v41, 4  ;;  %v265_v38 = vld [vmem:[%s3780_s21 + $0x9c] sm:$0x1] }
  0x50   : > { %v542_v51 = vsel %vm3793_vm4, %v537_v42, %v541_v17  ;;  %v557_v52 = vrot.slane %v556_v43, 4  ;;  %v579_v53 = vrot.slane %v577_v44, 5  ;;  %v585_v54 = vrot.slane %v583_v45, 5  ;;  %v266_v43 = vld [vmem:[%s3780_s21 + $0xa0] sm:$0xf] }
  0x51   : > { %v552_v56 = vsel %vm3793_vm4, %v547_v46, %v551_v34  ;;  %v567_v57 = vrot.slane %v566_v47, 4  ;;  %v587_v58 = vshrl.u32 %v257_v32, 16  ;;  %v2946_v59 = vcombine.low %v256_v27, %v257_v32 }
  0x52   : > { %v2878_v60 = vcombine.low %v542_v51, %v552_v56  ;;  %v562_v61 = vsel %vm3793_vm4, %v557_v52, %v561_v36  ;;  %v593_v62 = vshll.u32 %v258_v50, 16  ;;  %v597_v63 = vshrl.u32 %v258_v50, 16 }
  0x53   : > { %v572_v1 = vsel %vm3793_vm4, %v567_v57, %v571_v48  ;;  %v589_v2 = vrot.slane %v587_v58, 4  ;;  %3238 = vmatprep.mubr.msk.bf16.mxu0 %vm1125_vm1, %v2946_v59  ;;  %v603_v3 = vshll.u32 %v259_v55, 16  ;;  %v607_v4 = vshrl.u32 %v259_v55, 16  ;;  %v267_v48 = vld [vmem:[%s3780_s21 + $0xa4] sm:$0xf] }
  0x54   : > { %3166 = vmatprep.mubr.msk.bf16.mxu1 %vm1125_vm1, %v2878_v60  ;;  %v2879_v6 = vcombine.low %v562_v61, %v572_v1  ;;  %v595_v7 = vrot.slane %v593_v62, 5  ;;  %v599_v8 = vrot.slane %v597_v63, 4  ;;  %v2947_v9 = vcombine.low %v258_v50, %v259_v55  ;;  %v268_v1 = vld [vmem:[%s3780_s21 + $0xa8] sm:$0xf] }
  0x55   : > { %v605_v11 = vrot.slane %v603_v3, 5  ;;  %v609_v12 = vrot.slane %v607_v4, 4  ;;  %v580_v13 = vor.u32 %v579_v53, %v576_v49  ;;  %v590_v14 = vor.u32 %v589_v2, %v585_v54 }
  0x56   : > { %3167 = vmatmul.mubr.msk.bf16.gmra.mrb[20].mxu1 %vm1125_vm1, %v2879_v6  ;;  %3239 = vmatmul.mubr.msk.bf16.gmra.mrb[24].mxu0 %vm1125_vm1, %v2947_v9  ;;  %v600_v15 = vor.u32 %v599_v8, %v595_v7  ;;  %v613_v16 = vshll.u32 %v260_v0, 16  ;;  %v618_v17 = vshrl.u32 %v261_v5, 16  ;;  %v621_v18 = vshll.u32 %v261_v5, 16  ;;  %v269_v6 = vld [vmem:[%s3780_s21 + $0xac] sm:$0xf] }
  0x57   : > { %v581_v19 = vrot.slane %v580_v13, 4  ;;  %v591_v20 = vrot.slane %v590_v14, 4  ;;  %v610_v21 = vor.u32 %v609_v12, %v605_v11  ;;  %v627_v22 = vshll.u32 %v262_v10, 16 }
  0x58   : > { %v601_v24 = vrot.slane %v600_v15, 4  ;;  %v615_v25 = vrot.slane %v613_v16, 5  ;;  %v620_v26 = vrot.slane %v618_v17, 4  ;;  %v623_v27 = vrot.slane %v621_v18, 5  ;;  %v270_v15 = vld [vmem:[%s3780_s21 + $0xb0] sm:$0x1] }
  0x59   : > { %v586_v29 = vsel %vm3793_vm4, %v581_v19, %v585_v54  ;;  %v596_v30 = vsel %vm3793_vm4, %v591_v20, %v595_v7  ;;  %v611_v31 = vrot.slane %v610_v21, 4  ;;  %v629_v32 = vrot.slane %v627_v22, 5  ;;  %v271_v20 = vld [vmem:[%s3780_s21 + $0xb4] sm:$0xf] }
  0x5a   : > { %v2880_v34 = vcombine.low %v586_v29, %v596_v30  ;;  %v606_v35 = vsel %vm3793_vm4, %v601_v24, %v605_v11  ;;  %v631_v36 = vshrl.u32 %v262_v10, 16  ;;  %v2948_v37 = vcombine.low %v261_v5, %v262_v10 }
  0x5b   : > { %v616_v39 = vsel %vm3793_vm4, %v611_v31, %v615_v25  ;;  %v637_v40 = vshll.u32 %v263_v23, 16  ;;  %v641_v41 = vshrl.u32 %v263_v23, 16  ;;  %v647_v42 = vshll.u32 %v264_v28, 16  ;;  %v272_v25 = vld [vmem:[%s3780_s21 + $0xb8] sm:$0xf] }
  0x5c   : > { %3170 = vmatprep.mubr.msk.bf16.mxu1 %vm1125_vm1, %v2880_v34  ;;  %v2881_v44 = vcombine.low %v606_v35, %v616_v39  ;;  %v633_v45 = vrot.slane %v631_v36, 4  ;;  %3242 = vmatprep.mubr.msk.bf16.mxu0 %vm1125_vm1, %v2948_v37  ;;  %v651_v46 = vshrl.u32 %v264_v28, 16  ;;  %v2949_v47 = vcombine.low %v263_v23, %v264_v28  ;;  %v273_v39 = vld [vmem:[%s3780_s21 + $0xbc] sm:$0xf] }
  0x5d   : > { %v639_v49 = vrot.slane %v637_v40, 5  ;;  %v643_v50 = vrot.slane %v641_v41, 4  ;;  %v649_v51 = vrot.slane %v647_v42, 5  ;;  %v624_v52 = vor.u32 %v623_v27, %v620_v26 }
  0x5e   : > { %3171 = vmatmul.mubr.msk.bf16.gmra.mrb[24].mxu1 %vm1125_vm1, %v2881_v44  ;;  %v653_v53 = vrot.slane %v651_v46, 4  ;;  %3243 = vmatmul.mubr.msk.bf16.gmra.mrb[28].mxu0 %vm1125_vm1, %v2949_v47  ;;  %v634_v54 = vor.u32 %v633_v45, %v629_v32  ;;  %v657_v55 = vshll.u32 %v265_v38, 16  ;;  %v662_v56 = vshrl.u32 %v266_v43, 16  ;;  %v274_v44 = vld [vmem:[%s3780_s21 + $0xc0] sm:$0xf] }
  0x5f   : > { %v625_v57 = vrot.slane %v624_v52, 4  ;;  %v644_v58 = vor.u32 %v643_v50, %v639_v49  ;;  %v665_v59 = vshll.u32 %v266_v43, 16  ;;  %v671_v60 = vshll.u32 %v267_v48, 16 }
  0x60   : > { %v635_v61 = vrot.slane %v634_v54, 4  ;;  %v654_v62 = vor.u32 %v653_v53, %v649_v51  ;;  %v659_v63 = vrot.slane %v657_v55, 5  ;;  %v664_v0 = vrot.slane %v662_v56, 4  ;;  %v275_v53 = vld [vmem:[%s3780_s21 + $0xc4] sm:$0x1] }
  0x61   : > { %v630_v2 = vsel %vm3793_vm4, %v625_v57, %v629_v32  ;;  %v645_v3 = vrot.slane %v644_v58, 4  ;;  %v667_v4 = vrot.slane %v665_v59, 5  ;;  %v673_v5 = vrot.slane %v671_v60, 5  ;;  %v276_v58 = vld [vmem:[%s3780_s21 + $0xc8] sm:$0xf] }
  0x62   : > { %v640_v7 = vsel %vm3793_vm4, %v635_v61, %v639_v49  ;;  %v655_v8 = vrot.slane %v654_v62, 4  ;;  %v675_v9 = vshrl.u32 %v267_v48, 16  ;;  %v2950_v10 = vcombine.low %v266_v43, %v267_v48 }
  0x63   : > { %v2882_v11 = vcombine.low %v630_v2, %v640_v7  ;;  %v650_v12 = vsel %vm3793_vm4, %v645_v3, %v649_v51  ;;  %v681_v13 = vshll.u32 %v268_v1, 16  ;;  %v685_v14 = vshrl.u32 %v268_v1, 16 }
  0x64   : > { %v660_v16 = vsel %vm3793_vm4, %v655_v8, %v659_v63  ;;  %v677_v17 = vrot.slane %v675_v9, 4  ;;  %3246 = vmatprep.mubr.msk.bf16.mxu0 %vm1125_vm1, %v2950_v10  ;;  %v691_v18 = vshll.u32 %v269_v6, 16  ;;  %v695_v19 = vshrl.u32 %v269_v6, 16  ;;  %v277_v63 = vld [vmem:[%s3780_s21 + $0xcc] sm:$0xf] }
  0x65   : > { %3174 = vmatprep.mubr.msk.bf16.mxu1 %vm1125_vm1, %v2882_v11  ;;  %v2883_v21 = vcombine.low %v650_v12, %v660_v16  ;;  %v683_v22 = vrot.slane %v681_v13, 5  ;;  %v687_v23 = vrot.slane %v685_v14, 4  ;;  %v2951_v24 = vcombine.low %v268_v1, %v269_v6  ;;  %v278_v16 = vld [vmem:[%s3780_s21 + $0xd0] sm:$0xf] }
  0x66   : > { %v693_v26 = vrot.slane %v691_v18, 5  ;;  %v697_v27 = vrot.slane %v695_v19, 4  ;;  %v668_v28 = vor.u32 %v667_v4, %v664_v0  ;;  %v678_v29 = vor.u32 %v677_v17, %v673_v5 }
  0x67   : > { %3175 = vmatmul.mubr.msk.bf16.gmra.mrb[28].mxu1 %vm1125_vm1, %v2883_v21  ;;  %3247 = vmatmul.mubr.msk.bf16.gmra.mrb[32].mxu0 %vm1125_vm1, %v2951_v24  ;;  %v688_v30 = vor.u32 %v687_v23, %v683_v22  ;;  %v701_v31 = vshll.u32 %v270_v15, 16  ;;  %v706_v32 = vshrl.u32 %v271_v20, 16  ;;  %v709_v34 = vshll.u32 %v271_v20, 16  ;;  %v279_v21 = vld [vmem:[%s3780_s21 + $0xd4] sm:$0xf] }
  0x68   : > { %v669_v35 = vrot.slane %v668_v28, 4  ;;  %v679_v36 = vrot.slane %v678_v29, 4  ;;  %v698_v37 = vor.u32 %v697_v27, %v693_v26  ;;  %v715_v38 = vshll.u32 %v272_v25, 16 }
  0x69   : > { %v689_v40 = vrot.slane %v688_v30, 4  ;;  %v703_v41 = vrot.slane %v701_v31, 5  ;;  %v708_v42 = vrot.slane %v706_v32, 4  ;;  %v711_v43 = vrot.slane %v709_v34, 5  ;;  %v280_v30 = vld [vmem:[%s3780_s21 + $0xd8] sm:$0x1] }
  0x6a   : > { %v674_v45 = vsel %vm3793_vm4, %v669_v35, %v673_v5  ;;  %v684_v46 = vsel %vm3793_vm4, %v679_v36, %v683_v22  ;;  %v699_v47 = vrot.slane %v698_v37, 4  ;;  %v717_v48 = vrot.slane %v715_v38, 5  ;;  %v281_v36 = vld [vmem:[%s3780_s21 + $0xdc] sm:$0xf] }
  0x6b   : > { %v2884_v49 = vcombine.low %v674_v45, %v684_v46  ;;  %v694_v50 = vsel %vm3793_vm4, %v689_v40, %v693_v26  ;;  %v719_v51 = vshrl.u32 %v272_v25, 16  ;;  %v2952_v52 = vcombine.low %v271_v20, %v272_v25 }
  0x6c   : > { %v704_v54 = vsel %vm3793_vm4, %v699_v47, %v703_v41  ;;  %v725_v55 = vshll.u32 %v273_v39, 16  ;;  %v729_v56 = vshrl.u32 %v273_v39, 16  ;;  %v735_v57 = vshll.u32 %v274_v44, 16  ;;  %v282_v41 = vld [vmem:[%s3780_s21 + $0xe0] sm:$0xf] }
  0x6d   : > { %3178 = vmatprep.mubr.msk.bf16.mxu1 %vm1125_vm1, %v2884_v49  ;;  %v2885_v59 = vcombine.low %v694_v50, %v704_v54  ;;  %v721_v60 = vrot.slane %v719_v51, 4  ;;  %3250 = vmatprep.mubr.msk.bf16.mxu0 %vm1125_vm1, %v2952_v52  ;;  %v739_v61 = vshrl.u32 %v274_v44, 16  ;;  %v2953_v62 = vcombine.low %v273_v39, %v274_v44  ;;  %v283_v54 = vld [vmem:[%s3780_s21 + $0xe4] sm:$0xf] }
  0x6e   : > { %v727_v0 = vrot.slane %v725_v55, 5  ;;  %v731_v1 = vrot.slane %v729_v56, 4  ;;  %v737_v2 = vrot.slane %v735_v57, 5  ;;  %v712_v3 = vor.u32 %v711_v43, %v708_v42 }
  0x6f   : > { %3179 = vmatmul.mubr.msk.bf16.gmra.mrb[32].mxu1 %vm1125_vm1, %v2885_v59  ;;  %v741_v4 = vrot.slane %v739_v61, 4  ;;  %3251 = vmatmul.mubr.msk.bf16.gmra.mrb[36].mxu0 %vm1125_vm1, %v2953_v62  ;;  %v722_v5 = vor.u32 %v721_v60, %v717_v48  ;;  %v745_v6 = vshll.u32 %v275_v53, 16  ;;  %v750_v7 = vshrl.u32 %v276_v58, 16  ;;  %v284_v59 = vld [vmem:[%s3780_s21 + $0xe8] sm:$0xf] }
  0x70   : > { %v713_v8 = vrot.slane %v712_v3, 4  ;;  %v732_v9 = vor.u32 %v731_v1, %v727_v0  ;;  %v753_v10 = vshll.u32 %v276_v58, 16  ;;  %v759_v11 = vshll.u32 %v277_v63, 16 }
  0x71   : > { %v723_v12 = vrot.slane %v722_v5, 4  ;;  %v742_v13 = vor.u32 %v741_v4, %v737_v2  ;;  %v747_v14 = vrot.slane %v745_v6, 5  ;;  %v752_v15 = vrot.slane %v750_v7, 4  ;;  %v285_v4 = vld [vmem:[%s3780_s21 + $0xec] sm:$0x1] }
  0x72   : > { %v718_v17 = vsel %vm3793_vm4, %v713_v8, %v717_v48  ;;  %v733_v18 = vrot.slane %v732_v9, 4  ;;  %v755_v19 = vrot.slane %v753_v10, 5  ;;  %v761_v20 = vrot.slane %v759_v11, 5  ;;  %v286_v9 = vld [vmem:[%s3780_s21 + $0xf0] sm:$0xf] }
  0x73   : > { %v728_v22 = vsel %vm3793_vm4, %v723_v12, %v727_v0  ;;  %v743_v23 = vrot.slane %v742_v13, 4  ;;  %v763_v24 = vshrl.u32 %v277_v63, 16  ;;  %v2954_v25 = vcombine.low %v276_v58, %v277_v63 }
  0x74   : > { %v2886_v26 = vcombine.low %v718_v17, %v728_v22  ;;  %v738_v27 = vsel %vm3793_vm4, %v733_v18, %v737_v2  ;;  %v769_v28 = vshll.u32 %v278_v16, 16  ;;  %v773_v29 = vshrl.u32 %v278_v16, 16 }
  0x75   : > { %v748_v31 = vsel %vm3793_vm4, %v743_v23, %v747_v14  ;;  %v765_v32 = vrot.slane %v763_v24, 4  ;;  %3254 = vmatprep.mubr.msk.bf16.mxu0 %vm1125_vm1, %v2954_v25  ;;  %v779_v34 = vshll.u32 %v279_v21, 16  ;;  %v783_v35 = vshrl.u32 %v279_v21, 16  ;;  %v287_v14 = vld [vmem:[%s3780_s21 + $0xf4] sm:$0xf] }
  0x76   : > { %3182 = vmatprep.mubr.msk.bf16.mxu1 %vm1125_vm1, %v2886_v26  ;;  %v2887_v37 = vcombine.low %v738_v27, %v748_v31  ;;  %v771_v38 = vrot.slane %v769_v28, 5  ;;  %v775_v39 = vrot.slane %v773_v29, 4  ;;  %v2955_v40 = vcombine.low %v278_v16, %v279_v21  ;;  %v288_v31 = vld [vmem:[%s3780_s21 + $0xf8] sm:$0xf] }
  0x77   : > { %v781_v42 = vrot.slane %v779_v34, 5  ;;  %v785_v43 = vrot.slane %v783_v35, 4  ;;  %v756_v44 = vor.u32 %v755_v19, %v752_v15  ;;  %v766_v45 = vor.u32 %v765_v32, %v761_v20 }
  0x78   : > { %3183 = vmatmul.mubr.msk.bf16.gmra.mrb[36].mxu1 %vm1125_vm1, %v2887_v37  ;;  %3255 = vmatmul.mubr.msk.bf16.gmra.mrb[40].mxu0 %vm1125_vm1, %v2955_v40  ;;  %v776_v46 = vor.u32 %v775_v39, %v771_v38  ;;  %v789_v47 = vshll.u32 %v280_v30, 16  ;;  %v794_v48 = vshrl.u32 %v281_v36, 16  ;;  %v797_v49 = vshll.u32 %v281_v36, 16  ;;  %v289_v37 = vld [vmem:[%s3780_s21 + $0xfc] sm:$0xf] }
  0x79   : > { %v757_v50 = vrot.slane %v756_v44, 4  ;;  %v767_v51 = vrot.slane %v766_v45, 4  ;;  %v786_v52 = vor.u32 %v785_v43, %v781_v42  ;;  %v803_v53 = vshll.u32 %v282_v41, 16 }
  0x7a   : > { %v777_v55 = vrot.slane %v776_v46, 4  ;;  %v791_v56 = vrot.slane %v789_v47, 5  ;;  %v796_v57 = vrot.slane %v794_v48, 4  ;;  %v799_v58 = vrot.slane %v797_v49, 5  ;;  %v290_v46 = vld [vmem:[%s3780_s21 + $0x100] sm:$0x1] }
  0x7b   : > { %v762_v60 = vsel %vm3793_vm4, %v757_v50, %v761_v20  ;;  %v772_v61 = vsel %vm3793_vm4, %v767_v51, %v771_v38  ;;  %v787_v62 = vrot.slane %v786_v52, 4  ;;  %v805_v63 = vrot.slane %v803_v53, 5  ;;  %v291_v51 = vld [vmem:[%s3780_s21 + $0x104] sm:$0xf] }
  0x7c   : > { %v2888_v0 = vcombine.low %v762_v60, %v772_v61  ;;  %v782_v1 = vsel %vm3793_vm4, %v777_v55, %v781_v42  ;;  %v807_v2 = vshrl.u32 %v282_v41, 16  ;;  %v2956_v3 = vcombine.low %v281_v36, %v282_v41 }
  0x7d   : > { %v792_v5 = vsel %vm3793_vm4, %v787_v62, %v791_v56  ;;  %v813_v6 = vshll.u32 %v283_v54, 16  ;;  %v817_v7 = vshrl.u32 %v283_v54, 16  ;;  %v823_v8 = vshll.u32 %v284_v59, 16  ;;  %v292_v56 = vld [vmem:[%s3780_s21 + $0x108] sm:$0xf] }
  0x7e   : > { %3186 = vmatprep.mubr.msk.bf16.mxu1 %vm1125_vm1, %v2888_v0  ;;  %v2889_v10 = vcombine.low %v782_v1, %v792_v5  ;;  %v809_v11 = vrot.slane %v807_v2, 4  ;;  %3258 = vmatprep.mubr.msk.bf16.mxu0 %vm1125_vm1, %v2956_v3  ;;  %v827_v12 = vshrl.u32 %v284_v59, 16  ;;  %v2957_v13 = vcombine.low %v283_v54, %v284_v59  ;;  %v293_v5 = vld [vmem:[%s3780_s21 + $0x10c] sm:$0xf] }
  0x7f   : > { %v815_v15 = vrot.slane %v813_v6, 5  ;;  %v819_v16 = vrot.slane %v817_v7, 4  ;;  %v825_v17 = vrot.slane %v823_v8, 5  ;;  %v800_v18 = vor.u32 %v799_v58, %v796_v57 }
  0x80   : > { %3187 = vmatmul.mubr.msk.bf16.gmra.mrb[40].mxu1 %vm1125_vm1, %v2889_v10  ;;  %v829_v19 = vrot.slane %v827_v12, 4  ;;  %3259 = vmatmul.mubr.msk.bf16.gmra.mrb[44].mxu0 %vm1125_vm1, %v2957_v13  ;;  %v810_v20 = vor.u32 %v809_v11, %v805_v63  ;;  %v833_v21 = vshll.u32 %v285_v4, 16  ;;  %v838_v22 = vshrl.u32 %v286_v9, 16  ;;  %v294_v10 = vld [vmem:[%s3780_s21 + $0x110] sm:$0xf] }
  0x81   : > { %v801_v23 = vrot.slane %v800_v18, 4  ;;  %v820_v24 = vor.u32 %v819_v16, %v815_v15  ;;  %v841_v25 = vshll.u32 %v286_v9, 16  ;;  %v847_v26 = vshll.u32 %v287_v14, 16 }
  0x82   : > { %v811_v27 = vrot.slane %v810_v20, 4  ;;  %v830_v28 = vor.u32 %v829_v19, %v825_v17  ;;  %v835_v29 = vrot.slane %v833_v21, 5  ;;  %v840_v30 = vrot.slane %v838_v22, 4  ;;  %v295_v19 = vld [vmem:[%s3780_s21 + $0x114] sm:$0x1] }
  0x83   : > { %v806_v32 = vsel %vm3793_vm4, %v801_v23, %v805_v63  ;;  %v821_v34 = vrot.slane %v820_v24, 4  ;;  %v843_v35 = vrot.slane %v841_v25, 5  ;;  %v849_v36 = vrot.slane %v847_v26, 5  ;;  %v296_v24 = vld [vmem:[%s3780_s21 + $0x118] sm:$0xf] }
  0x84   : > { %v816_v38 = vsel %vm3793_vm4, %v811_v27, %v815_v15  ;;  %v831_v39 = vrot.slane %v830_v28, 4  ;;  %v851_v40 = vshrl.u32 %v287_v14, 16  ;;  %v2958_v41 = vcombine.low %v286_v9, %v287_v14 }
  0x85   : > { %v2890_v42 = vcombine.low %v806_v32, %v816_v38  ;;  %v826_v43 = vsel %vm3793_vm4, %v821_v34, %v825_v17  ;;  %v857_v44 = vshll.u32 %v288_v31, 16  ;;  %v861_v45 = vshrl.u32 %v288_v31, 16 }
  0x86   : > { %v836_v47 = vsel %vm3793_vm4, %v831_v39, %v835_v29  ;;  %v853_v48 = vrot.slane %v851_v40, 4  ;;  %3262 = vmatprep.mubr.msk.bf16.mxu0 %vm1125_vm1, %v2958_v41  ;;  %v867_v49 = vshll.u32 %v289_v37, 16  ;;  %v871_v50 = vshrl.u32 %v289_v37, 16  ;;  %v297_v29 = vld [vmem:[%s3780_s21 + $0x11c] sm:$0xf] }
  0x87   : > { %3190 = vmatprep.mubr.msk.bf16.mxu1 %vm1125_vm1, %v2890_v42  ;;  %v2891_v52 = vcombine.low %v826_v43, %v836_v47  ;;  %v859_v53 = vrot.slane %v857_v44, 5  ;;  %v863_v54 = vrot.slane %v861_v45, 4  ;;  %v2959_v55 = vcombine.low %v288_v31, %v289_v37  ;;  %v298_v47 = vld [vmem:[%s3780_s21 + $0x120] sm:$0xf] }
  0x88   : > { %v869_v57 = vrot.slane %v867_v49, 5  ;;  %v873_v58 = vrot.slane %v871_v50, 4  ;;  %v844_v59 = vor.u32 %v843_v35, %v840_v30  ;;  %v854_v60 = vor.u32 %v853_v48, %v849_v36 }
  0x89   : > { %3191 = vmatmul.mubr.msk.bf16.gmra.mrb[44].mxu1 %vm1125_vm1, %v2891_v52  ;;  %3263 = vmatmul.mubr.msk.bf16.gmra.mrb[48].mxu0 %vm1125_vm1, %v2959_v55  ;;  %v864_v61 = vor.u32 %v863_v54, %v859_v53  ;;  %v877_v62 = vshll.u32 %v290_v46, 16  ;;  %v882_v63 = vshrl.u32 %v291_v51, 16  ;;  %v885_v0 = vshll.u32 %v291_v51, 16  ;;  %v299_v52 = vld [vmem:[%s3780_s21 + $0x124] sm:$0xf] }
  0x8a   : > { %v845_v1 = vrot.slane %v844_v59, 4  ;;  %v855_v2 = vrot.slane %v854_v60, 4  ;;  %v874_v3 = vor.u32 %v873_v58, %v869_v57  ;;  %v891_v4 = vshll.u32 %v292_v56, 16 }
  0x8b   : > { %v865_v6 = vrot.slane %v864_v61, 4  ;;  %v879_v7 = vrot.slane %v877_v62, 5  ;;  %v884_v8 = vrot.slane %v882_v63, 4  ;;  %v887_v9 = vrot.slane %v885_v0, 5  ;;  %v300_v61 = vld [vmem:[%s3780_s21 + $0x128] sm:$0x1] }
  0x8c   : > { %v850_v11 = vsel %vm3793_vm4, %v845_v1, %v849_v36  ;;  %v860_v12 = vsel %vm3793_vm4, %v855_v2, %v859_v53  ;;  %v875_v13 = vrot.slane %v874_v3, 4  ;;  %v893_v14 = vrot.slane %v891_v4, 5  ;;  %v301_v2 = vld [vmem:[%s3780_s21 + $0x12c] sm:$0xf] }
  0x8d   : > { %v2892_v15 = vcombine.low %v850_v11, %v860_v12  ;;  %v870_v16 = vsel %vm3793_vm4, %v865_v6, %v869_v57  ;;  %v895_v17 = vshrl.u32 %v292_v56, 16  ;;  %v2960_v18 = vcombine.low %v291_v51, %v292_v56 }
  0x8e   : > { %v880_v20 = vsel %vm3793_vm4, %v875_v13, %v879_v7  ;;  %v901_v21 = vshll.u32 %v293_v5, 16  ;;  %v905_v22 = vshrl.u32 %v293_v5, 16  ;;  %v911_v23 = vshll.u32 %v294_v10, 16  ;;  %v302_v7 = vld [vmem:[%s3780_s21 + $0x130] sm:$0xf] }
  0x8f   : > { %3194 = vmatprep.mubr.msk.bf16.mxu1 %vm1125_vm1, %v2892_v15  ;;  %v2893_v25 = vcombine.low %v870_v16, %v880_v20  ;;  %v897_v26 = vrot.slane %v895_v17, 4  ;;  %3266 = vmatprep.mubr.msk.bf16.mxu0 %vm1125_vm1, %v2960_v18  ;;  %v915_v27 = vshrl.u32 %v294_v10, 16  ;;  %v2961_v28 = vcombine.low %v293_v5, %v294_v10  ;;  %v303_v20 = vld [vmem:[%s3780_s21 + $0x134] sm:$0xf] }
  0x90   : > { %v903_v30 = vrot.slane %v901_v21, 5  ;;  %v907_v31 = vrot.slane %v905_v22, 4  ;;  %v913_v32 = vrot.slane %v911_v23, 5  ;;  %v888_v34 = vor.u32 %v887_v9, %v884_v8 }
  0x91   : > { %3195 = vmatmul.mubr.msk.bf16.gmra.mrb[48].mxu1 %vm1125_vm1, %v2893_v25  ;;  %v917_v35 = vrot.slane %v915_v27, 4  ;;  %3267 = vmatmul.mubr.msk.bf16.gmra.mrb[52].mxu0 %vm1125_vm1, %v2961_v28  ;;  %v898_v36 = vor.u32 %v897_v26, %v893_v14  ;;  %v921_v37 = vshll.u32 %v295_v19, 16  ;;  %v926_v38 = vshrl.u32 %v296_v24, 16  ;;  %v304_v25 = vld [vmem:[%s3780_s21 + $0x138] sm:$0xf] }
  0x92   : > { %v889_v39 = vrot.slane %v888_v34, 4  ;;  %v908_v40 = vor.u32 %v907_v31, %v903_v30  ;;  %v929_v41 = vshll.u32 %v296_v24, 16  ;;  %v935_v42 = vshll.u32 %v297_v29, 16 }
  0x93   : > { %v899_v43 = vrot.slane %v898_v36, 4  ;;  %v918_v44 = vor.u32 %v917_v35, %v913_v32  ;;  %v923_v45 = vrot.slane %v921_v37, 5  ;;  %v928_v46 = vrot.slane %v926_v38, 4 }
  0x94   : > { %v894_v48 = vsel %vm3793_vm4, %v889_v39, %v893_v14  ;;  %v909_v49 = vrot.slane %v908_v40, 4  ;;  %v931_v50 = vrot.slane %v929_v41, 5  ;;  %v937_v51 = vrot.slane %v935_v42, 5  ;;  %v305_v39 = vld [vmem:[%s3780_s21 + $0x13c] sm:$0x1]  ;;  %s3603_s21 = sshll.u32 %s3680_s14, 4  ;;  %s3604_s21 = int_to_ptr.vmem [resolvable:$false] %s3603_s21 }
  0x95   : > { %v904_v53 = vsel %vm3793_vm4, %v899_v43, %v903_v30  ;;  %v919_v54 = vrot.slane %v918_v44, 4  ;;  %v939_v55 = vshrl.u32 %v297_v29, 16  ;;  %v2962_v56 = vcombine.low %v296_v24, %v297_v29  ;;  %s3605_s22 = scalar_lea.vmem %s3604_s21, 4096  ;;  %p3606_p1 = scmp.lt.s32.totalorder %s4554_s9, %s3604_s21 }
  0x96   : > { %v2894_v57 = vcombine.low %v894_v48, %v904_v53  ;;  %v914_v58 = vsel %vm3793_vm4, %v909_v49, %v913_v32  ;;  %v945_v59 = vshll.u32 %v298_v47, 16  ;;  %v949_v60 = vshrl.u32 %v298_v47, 16  ;;  %p3607_p2 = scmp.lt.s32.totalorder %s3605_s22, %s3599_s13 }
  0x97   : > { %v924_v62 = vsel %vm3793_vm4, %v919_v54, %v923_v45  ;;  %v941_v63 = vrot.slane %v939_v55, 4  ;;  %3270 = vmatprep.mubr.msk.bf16.mxu0 %vm1125_vm1, %v2962_v56  ;;  %v955_v0 = vshll.u32 %v299_v52, 16  ;;  %v959_v1 = vshrl.u32 %v299_v52, 16 }
  0x98   : > { %3198 = vmatprep.mubr.msk.bf16.mxu1 %vm1125_vm1, %v2894_v57  ;;  %v2895_v3 = vcombine.low %v914_v58, %v924_v62  ;;  %v947_v4 = vrot.slane %v945_v59, 5  ;;  %v951_v5 = vrot.slane %v949_v60, 4  ;;  %v2963_v6 = vcombine.low %v298_v47, %v299_v52  ;;  %p3608_p3 = por %p3607_p2, %p3606_p1 }
  0x99   : > { %v957_v8 = vrot.slane %v955_v0, 5  ;;  %v961_v9 = vrot.slane %v959_v1, 4  ;;  %v932_v10 = vor.u32 %v931_v50, %v928_v46  ;;  %v942_v11 = vor.u32 %v941_v63, %v937_v51 }
  0x9a   : > { %3199 = vmatmul.mubr.msk.bf16.gmra.mrb[52].mxu1 %vm1125_vm1, %v2895_v3  ;;  %3271 = vmatmul.mubr.msk.bf16.gmra.mrb[56].mxu0 %vm1125_vm1, %v2963_v6  ;;  %v952_v12 = vor.u32 %v951_v5, %v947_v4  ;;  %v965_v13 = vshll.u32 %v300_v61, 16  ;;  %v970_v14 = vshrl.u32 %v301_v2, 16  ;;  %v973_v15 = vshll.u32 %v301_v2, 16  ;;  %v4063_v6 = vld [vmem:[%s4614_s2] ss:$0 sm:$0xff]  ;;  %p3609_p5 = pnand %p3608_p3, %p3602_p0 }
  0x9b   : > { %v933_v16 = vrot.slane %v932_v10, 4  ;;  %v943_v17 = vrot.slane %v942_v11, 4  ;;  %v962_v18 = vor.u32 %v961_v9, %v957_v8  ;;  %v979_v19 = vshll.u32 %v302_v7, 16 }
  0x9c   : > { %v953_v21 = vrot.slane %v952_v12, 4  ;;  %v967_v22 = vrot.slane %v965_v13, 5  ;;  %v972_v23 = vrot.slane %v970_v14, 4  ;;  %v975_v24 = vrot.slane %v973_v15, 5 }
  0x9d   : > { %v938_v26 = vsel %vm3793_vm4, %v933_v16, %v937_v51  ;;  %v948_v27 = vsel %vm3793_vm4, %v943_v17, %v947_v4  ;;  %v963_v28 = vrot.slane %v962_v18, 4  ;;  %v981_v29 = vrot.slane %v979_v19, 5  ;;  %v4069_v16 = vld [vmem:[%s4615_s3] ss:$0 sm:$0xff] }
  0x9e   : > { %v2896_v30 = vcombine.low %v938_v26, %v948_v27  ;;  %v958_v31 = vsel %vm3793_vm4, %v953_v21, %v957_v8  ;;  %v983_v32 = vshrl.u32 %v302_v7, 16  ;;  %v2964_v34 = vcombine.low %v301_v2, %v302_v7 }
  0x9f   : > { %v968_v35 = vsel %vm3793_vm4, %v963_v28, %v967_v22  ;;  %v989_v36 = vshll.u32 %v303_v20, 16  ;;  %v993_v37 = vshrl.u32 %v303_v20, 16  ;;  %v999_v38 = vshll.u32 %v304_v25, 16 }
  0xa0   : > { %3202 = vmatprep.mubr.msk.bf16.mxu1 %vm1125_vm1, %v2896_v30  ;;  %v2897_v40 = vcombine.low %v958_v31, %v968_v35  ;;  %v985_v41 = vrot.slane %v983_v32, 4  ;;  %3274 = vmatprep.mubr.msk.bf16.mxu0 %vm1125_vm1, %v2964_v34  ;;  %v1003_v42 = vshrl.u32 %v304_v25, 16  ;;  %v2965_v43 = vcombine.low %v303_v20, %v304_v25 }
  0xa1   : > { %v991_v44 = vrot.slane %v989_v36, 5  ;;  %v995_v45 = vrot.slane %v993_v37, 4  ;;  %v1001_v46 = vrot.slane %v999_v38, 5  ;;  %v976_v47 = vor.u32 %v975_v24, %v972_v23 }
  0xa2   : > { %3203 = vmatmul.mubr.msk.bf16.gmra.mrb[56].mxu1 %vm1125_vm1, %v2897_v40  ;;  %v1005_v48 = vrot.slane %v1003_v42, 4  ;;  %3275 = vmatmul.mubr.msk.bf16.gmra.mrb[60].mxu0 %vm1125_vm1, %v2965_v43  ;;  %v986_v49 = vor.u32 %v985_v41, %v981_v29  ;;  %v1009_v50 = vshll.u32 %v305_v39, 16 }
  0xa3   : > { %v977_v51 = vrot.slane %v976_v47, 4  ;;  %v996_v52 = vor.u32 %v995_v45, %v991_v44 }
  0xa4   : > { %v987_v53 = vrot.slane %v986_v49, 4  ;;  %v1006_v54 = vor.u32 %v1005_v48, %v1001_v46  ;;  %v1011_v55 = vrot.slane %v1009_v50, 5 }
  0xa5   : > { %v982_v56 = vsel %vm3793_vm4, %v977_v51, %v981_v29  ;;  %v997_v57 = vrot.slane %v996_v52, 4 }
  0xa6   : > { %v992_v58 = vsel %vm3793_vm4, %v987_v53, %v991_v44  ;;  %v1007_v59 = vrot.slane %v1006_v54, 4 }
  0xa7   : > { %v2898_v60 = vcombine.low %v982_v56, %v992_v58  ;;  %v1002_v61 = vsel %vm3793_vm4, %v997_v57, %v1001_v46 }
  0xa8   : > { %v1012_v62 = vsel %vm3793_vm4, %v1007_v59, %v1011_v55 }
  0xa9   : > { %3206 = vmatprep.mubr.msk.bf16.mxu1 %vm1125_vm1, %v2898_v60  ;;  %v2899_v63 = vcombine.low %v1002_v61, %v1012_v62 }
  0xab   : > { %3207 = vmatmul.mubr.msk.bf16.gmra.mrb[60].mxu1 %vm1125_vm1, %v2899_v63 }
  0xf5   : > { %v3216_v0 = vpop.f32.mrb[0].mxu0 }
  0xf6   : > { %v1817_v1 = vpop.f32.mrb[1].mxu0 }
  0xf7   : > { %v3217_v2 = vpop.f32.mrb[2].mxu0 }
  0xf8   : > { %v1820_v3 = vpop.f32.mrb[3].mxu0 }
  0xfe   : > { %v3220_v4 = vpop.f32.mrb[4].mxu0 }
  0xff   : > { %v3148_v5 = vpop.f32.mrb[0].mxu1  ;;  %v1833_v7 = vpop.f32.mrb[5].mxu0 }
 0x100   : > { %v1826_v8 = vadd.f32 %v3216_v0, %v3148_v5  ;;  %v1260_v33 = vpop.f32.mrb[1].mxu1  ;;  %v3221_v9 = vpop.f32.mrb[6].mxu0 }
 0x101   : > { %v1818_v10 = vadd.f32 %v1817_v1, %v1260_v33  ;;  %v3149_v11 = vpop.f32.mrb[2].mxu1  ;;  %v1836_v12 = vpop.f32.mrb[7].mxu0 }
 0x102   : > { %v2081_v13 = vmul.f32 %v4063_v6, %v1826_v8  ;;  %v1829_v14 = vadd.f32 %v3217_v2, %v3149_v11  ;;  %v1263_v15 = vpop.f32.mrb[3].mxu1 }
 0x103   : > { %v1821_v17 = vadd.f32 %v1820_v3, %v1263_v15  ;;  %v2079_v20 = vmul.f32 %v4063_v6, %v1818_v10 }
 0x104   : > { %v2082_v18 = vmul.f32 %v4063_v6, %v1829_v14  ;;  %v4075_v21 = vadd.f32 %v4069_v16, %v2081_v13 }
 0x105   : > { %v2080_v19 = vmul.f32 %v4063_v6, %v1821_v17  ;;  %v4086_v34 = vadd.f32 %v4069_v16, %v2079_v20 }
 0x106   : > { %v4078_v22 = vadd.f32 %v4069_v16, %v2082_v18 }
 0x107   : > { %v3152_v23 = vpop.f32.mrb[4].mxu1  ;;  %v3224_v24 = vpop.f32.mrb[8].mxu0  ;;  %v4081_v25 = vadd.f32 %v4069_v16, %v2080_v19 }
 0x108   : > { %v1842_v26 = vadd.f32 %v3220_v4, %v3152_v23  ;;  %v1276_v27 = vpop.f32.mrb[5].mxu1  ;;  %v3403_v28 = vpack.i.bf16 %v4078_v22, %v4075_v21  ;;  %v1849_v29 = vpop.f32.mrb[9].mxu0 }
 0x109   : > { %v1834_v30 = vadd.f32 %v1833_v7, %v1276_v27  ;;  %v3153_v31 = vpop.f32.mrb[6].mxu1  ;;  %v3225_v32 = vpop.f32.mrb[10].mxu0  ;;  %v3408_v41 = vpack.i.bf16 %v4081_v25, %v4086_v34 }
 0x10a   : > { %v2085_v35 = vmul.f32 %v4063_v6, %v1842_v26  ;;  %v1845_v36 = vadd.f32 %v3221_v9, %v3153_v31  ;;  %3404 = vrot.lane.b32.xlu0 %v3403_v28, %s3679_s30  ;;  %v1279_v37 = vpop.f32.mrb[7].mxu1  ;;  %v1852_v38 = vpop.f32.mrb[11].mxu0 }
 0x10b   : > { %v1837_v39 = vadd.f32 %v1836_v12, %v1279_v37  ;;  %v2083_v43 = vmul.f32 %v4063_v6, %v1834_v30 }
 0x10c   : > { %v2086_v40 = vmul.f32 %v4063_v6, %v1845_v36  ;;  %v4097_v44 = vadd.f32 %v4069_v16, %v2085_v35 }
 0x10d   : > { %v2084_v42 = vmul.f32 %v4063_v6, %v1837_v39  ;;  %v4108_v56 = vadd.f32 %v4069_v16, %v2083_v43 }
 0x10e   : > { %3409 = vrot.lane.b32.xlu0 %v3408_v41, %s3679_s30  ;;  %v4100_v45 = vadd.f32 %v4069_v16, %v2086_v40 }
 0x10f   : > { %v3156_v46 = vpop.f32.mrb[8].mxu1  ;;  %v3228_v47 = vpop.f32.mrb[12].mxu0  ;;  %v4103_v48 = vadd.f32 %v4069_v16, %v2084_v42 }
 0x110   : > { %v1858_v49 = vadd.f32 %v3224_v24, %v3156_v46  ;;  %v1292_v50 = vpop.f32.mrb[9].mxu1  ;;  %v3413_v51 = vpack.i.bf16 %v4100_v45, %v4097_v44  ;;  %v1865_v52 = vpop.f32.mrb[13].mxu0 }
 0x111   : > { %v1850_v53 = vadd.f32 %v1849_v29, %v1292_v50  ;;  %v3157_v54 = vpop.f32.mrb[10].mxu1  ;;  %v3229_v55 = vpop.f32.mrb[14].mxu0  ;;  %v3418_v0 = vpack.i.bf16 %v4103_v48, %v4108_v56 }
 0x112   : > { %v2089_v57 = vmul.f32 %v4063_v6, %v1858_v49  ;;  %v1861_v58 = vadd.f32 %v3225_v32, %v3157_v54  ;;  %3414 = vrot.lane.b32.xlu1 %v3413_v51, %s3679_s30  ;;  %v1295_v59 = vpop.f32.mrb[11].mxu1  ;;  %v1868_v60 = vpop.f32.mrb[15].mxu0 }
 0x113   : > { %v2087_v61 = vmul.f32 %v4063_v6, %v1850_v53  ;;  %v1853_v62 = vadd.f32 %v1852_v38, %v1295_v59 }
 0x114   : > { %v2090_v63 = vmul.f32 %v4063_v6, %v1861_v58  ;;  %v4118_v2 = vadd.f32 %v4069_v16, %v2089_v57 }
 0x115   : > { %v2088_v1 = vmul.f32 %v4063_v6, %v1853_v62  ;;  %v4125_v4 = vadd.f32 %v4069_v16, %v2087_v61 }
 0x116   : > { %v4121_v3 = vadd.f32 %v4069_v16, %v2090_v63  ;;  %3419 = vrot.lane.b32.xlu1 %v3418_v0, %s3679_s30 }
 0x117   : > { %v4128_v5 = vadd.f32 %v4069_v16, %v2088_v1 }
 0x118   : > { %v3160_v7 = vpop.f32.mrb[12].mxu1  ;;  %v3423_v8 = vpack.i.bf16 %v4121_v3, %v4118_v2  ;;  %v3232_v33 = vpop.f32.mrb[16].mxu0 }
 0x119   : > { %v1874_v9 = vadd.f32 %v3228_v47, %v3160_v7  ;;  %v1308_v10 = vpop.f32.mrb[13].mxu1  ;;  %v3428_v11 = vpack.i.bf16 %v4128_v5, %v4125_v4  ;;  %v1881_v12 = vpop.f32.mrb[17].mxu0 }
 0x11a   : > { %v1866_v13 = vadd.f32 %v1865_v52, %v1308_v10  ;;  %v3161_v14 = vpop.f32.mrb[14].mxu1  ;;  %3424 = vrot.lane.b32.xlu1 %v3423_v8, %s3679_s30  ;;  %v3233_v15 = vpop.f32.mrb[18].mxu0 }
 0x11b   : > { %v2093_v17 = vmul.f32 %v4063_v6, %v1874_v9  ;;  %v1877_v18 = vadd.f32 %v3229_v55, %v3161_v14  ;;  %v1311_v19 = vpop.f32.mrb[15].mxu1  ;;  %3429 = vrot.lane.b32.xlu0 %v3428_v11, %s3679_s30  ;;  %v1884_v20 = vpop.f32.mrb[19].mxu0 }
 0x11c   : > { %v2091_v23 = vmul.f32 %v4063_v6, %v1866_v13  ;;  %v1869_v24 = vadd.f32 %v1868_v60, %v1311_v19 }
 0x11d   : > { %v2094_v26 = vmul.f32 %v4063_v6, %v1877_v18  ;;  %v4141_v28 = vadd.f32 %v4069_v16, %v2093_v17 }
 0x11e   : > { %v2092_v27 = vmul.f32 %v4063_v6, %v1869_v24  ;;  %v4147_v30 = vadd.f32 %v4069_v16, %v2091_v23 }
 0x11f   : > { %v4144_v29 = vadd.f32 %v4069_v16, %v2094_v26 }
 0x120   : > { %v4150_v31 = vadd.f32 %v4069_v16, %v2092_v27  ;;  %v3164_v32 = vpop.f32.mrb[16].mxu1  ;;  %v3236_v35 = vpop.f32.mrb[20].mxu0 }
 0x121   : > { %v1890_v36 = vadd.f32 %v3232_v33, %v3164_v32  ;;  %v1324_v37 = vpop.f32.mrb[17].mxu1  ;;  %v3433_v38 = vpack.i.bf16 %v4144_v29, %v4141_v28  ;;  %v1897_v39 = vpop.f32.mrb[21].mxu0 }
 0x122   : > { %v1882_v40 = vadd.f32 %v1881_v12, %v1324_v37  ;;  %v3165_v41 = vpop.f32.mrb[18].mxu1  ;;  %v3438_v42 = vpack.i.bf16 %v4150_v31, %v4147_v30  ;;  %v3237_v43 = vpop.f32.mrb[22].mxu0 }
 0x123   : > { %v2097_v46 = vmul.f32 %v4063_v6, %v1890_v36  ;;  %v1893_v47 = vadd.f32 %v3233_v15, %v3165_v41  ;;  %3434 = vrot.lane.b32.xlu1 %v3433_v38, %s3679_s30  ;;  %v1327_v49 = vpop.f32.mrb[19].mxu1  ;;  %v1900_v50 = vpop.f32.mrb[23].mxu0 }
 0x124   : > { %v2095_v51 = vmul.f32 %v4063_v6, %v1882_v40  ;;  %v1885_v52 = vadd.f32 %v1884_v20, %v1327_v49  ;;  %3439 = vrot.lane.b32.xlu0 %v3438_v42, %s3679_s30 }
 0x125   : > { %v2098_v53 = vmul.f32 %v4063_v6, %v1893_v47  ;;  %v4163_v55 = vadd.f32 %v4069_v16, %v2097_v46 }
 0x126   : > { %v2096_v54 = vmul.f32 %v4063_v6, %v1885_v52  ;;  %v4169_v58 = vadd.f32 %v4069_v16, %v2095_v51 }
 0x127   : > { %v4166_v57 = vadd.f32 %v4069_v16, %v2098_v53 }
 0x128   : > { %v4172_v59 = vadd.f32 %v4069_v16, %v2096_v54 }
 0x129   : > { %v3168_v60 = vpop.f32.mrb[20].mxu1  ;;  %v3443_v61 = vpack.i.bf16 %v4166_v57, %v4163_v55  ;;  %v3240_v62 = vpop.f32.mrb[24].mxu0 }
 0x12a   : > { %v1906_v63 = vadd.f32 %v3236_v35, %v3168_v60  ;;  %v1340_v0 = vpop.f32.mrb[21].mxu1  ;;  %v3448_v1 = vpack.i.bf16 %v4172_v59, %v4169_v58  ;;  %v1913_v7 = vpop.f32.mrb[25].mxu0 }
 0x12b   : > { %v1898_v8 = vadd.f32 %v1897_v39, %v1340_v0  ;;  %v3169_v33 = vpop.f32.mrb[22].mxu1  ;;  %3444 = vrot.lane.b32.xlu1 %v3443_v61, %s3679_s30  ;;  %v3241_v9 = vpop.f32.mrb[26].mxu0 }
 0x12c   : > { %v2101_v10 = vmul.f32 %v4063_v6, %v1906_v63  ;;  %v1909_v11 = vadd.f32 %v3237_v43, %v3169_v33  ;;  %v1343_v12 = vpop.f32.mrb[23].mxu1  ;;  %3449 = vrot.lane.b32.xlu0 %v3448_v1, %s3679_s30  ;;  %v1916_v13 = vpop.f32.mrb[27].mxu0 }
 0x12d   : > { %v2099_v14 = vmul.f32 %v4063_v6, %v1898_v8  ;;  %v1901_v15 = vadd.f32 %v1900_v50, %v1343_v12 }
 0x12e   : > { %v2102_v17 = vmul.f32 %v4063_v6, %v1909_v11  ;;  %v4185_v19 = vadd.f32 %v4069_v16, %v2101_v10 }
 0x12f   : > { %v2100_v18 = vmul.f32 %v4063_v6, %v1901_v15  ;;  %v4191_v23 = vadd.f32 %v4069_v16, %v2099_v14 }
 0x130   : > { %v4188_v20 = vadd.f32 %v4069_v16, %v2102_v17 }
 0x131   : > { %v4194_v24 = vadd.f32 %v4069_v16, %v2100_v18  ;;  %v3172_v26 = vpop.f32.mrb[24].mxu1  ;;  %v3244_v27 = vpop.f32.mrb[28].mxu0 }
 0x132   : > { %v1922_v32 = vadd.f32 %v3240_v62, %v3172_v26  ;;  %v1356_v35 = vpop.f32.mrb[25].mxu1  ;;  %v3453_v36 = vpack.i.bf16 %v4188_v20, %v4185_v19  ;;  %v1929_v37 = vpop.f32.mrb[29].mxu0 }
 0x133   : > { %v1914_v38 = vadd.f32 %v1913_v7, %v1356_v35  ;;  %v3173_v39 = vpop.f32.mrb[26].mxu1  ;;  %v3458_v40 = vpack.i.bf16 %v4194_v24, %v4191_v23  ;;  %v3245_v41 = vpop.f32.mrb[30].mxu0 }
 0x134   : > { %v2105_v42 = vmul.f32 %v4063_v6, %v1922_v32  ;;  %v1925_v43 = vadd.f32 %v3241_v9, %v3173_v39  ;;  %3454 = vrot.lane.b32.xlu1 %v3453_v36, %s3679_s30  ;;  %v1359_v46 = vpop.f32.mrb[27].mxu1  ;;  %v1932_v47 = vpop.f32.mrb[31].mxu0 }
 0x135   : > { %v2103_v49 = vmul.f32 %v4063_v6, %v1914_v38  ;;  %v1917_v50 = vadd.f32 %v1916_v13, %v1359_v46  ;;  %3459 = vrot.lane.b32.xlu0 %v3458_v40, %s3679_s30 }
 0x136   : > { %v2106_v51 = vmul.f32 %v4063_v6, %v1925_v43  ;;  %v4207_v53 = vadd.f32 %v4069_v16, %v2105_v42 }
 0x137   : > { %v2104_v52 = vmul.f32 %v4063_v6, %v1917_v50  ;;  %v4213_v60 = vadd.f32 %v4069_v16, %v2103_v49 }
 0x138   : > { %v4210_v54 = vadd.f32 %v4069_v16, %v2106_v51 }
 0x139   : > { %v4216_v61 = vadd.f32 %v4069_v16, %v2104_v52 }
 0x13a   : > { %v3176_v62 = vpop.f32.mrb[28].mxu1  ;;  %v3463_v63 = vpack.i.bf16 %v4210_v54, %v4207_v53  ;;  %v3248_v0 = vpop.f32.mrb[32].mxu0 }
 0x13b   : > { %v1938_v1 = vadd.f32 %v3244_v27, %v3176_v62  ;;  %v1372_v7 = vpop.f32.mrb[29].mxu1  ;;  %v3468_v8 = vpack.i.bf16 %v4216_v61, %v4213_v60  ;;  %v1945_v33 = vpop.f32.mrb[33].mxu0 }
 0x13c   : > { %v1930_v9 = vadd.f32 %v1929_v37, %v1372_v7  ;;  %v3177_v10 = vpop.f32.mrb[30].mxu1  ;;  %3464 = vrot.lane.b32.xlu1 %v3463_v63, %s3679_s30  ;;  %v3249_v11 = vpop.f32.mrb[34].mxu0 }
 0x13d   : > { %v2109_v12 = vmul.f32 %v4063_v6, %v1938_v1  ;;  %v1941_v13 = vadd.f32 %v3245_v41, %v3177_v10  ;;  %v1375_v14 = vpop.f32.mrb[31].mxu1  ;;  %3469 = vrot.lane.b32.xlu0 %v3468_v8, %s3679_s30  ;;  %v1948_v15 = vpop.f32.mrb[35].mxu0 }
 0x13e   : > { %v2107_v17 = vmul.f32 %v4063_v6, %v1930_v9  ;;  %v1933_v18 = vadd.f32 %v1932_v47, %v1375_v14 }
 0x13f   : > { %v2110_v26 = vmul.f32 %v4063_v6, %v1941_v13  ;;  %v4229_v32 = vadd.f32 %v4069_v16, %v2109_v12 }
 0x140   : > { %v2108_v27 = vmul.f32 %v4063_v6, %v1933_v18  ;;  %v4235_v36 = vadd.f32 %v4069_v16, %v2107_v17 }
 0x141   : > { %v4232_v35 = vadd.f32 %v4069_v16, %v2110_v26 }
 0x142   : > { %v4238_v37 = vadd.f32 %v4069_v16, %v2108_v27  ;;  %v3180_v38 = vpop.f32.mrb[32].mxu1  ;;  %v3252_v39 = vpop.f32.mrb[36].mxu0 }
 0x143   : > { %v1954_v40 = vadd.f32 %v3248_v0, %v3180_v38  ;;  %v1388_v41 = vpop.f32.mrb[33].mxu1  ;;  %v3473_v42 = vpack.i.bf16 %v4232_v35, %v4229_v32  ;;  %v1961_v43 = vpop.f32.mrb[37].mxu0 }
 0x144   : > { %v1946_v46 = vadd.f32 %v1945_v33, %v1388_v41  ;;  %v3181_v47 = vpop.f32.mrb[34].mxu1  ;;  %v3478_v49 = vpack.i.bf16 %v4238_v37, %v4235_v36  ;;  %v3253_v50 = vpop.f32.mrb[38].mxu0 }
 0x145   : > { %v2113_v51 = vmul.f32 %v4063_v6, %v1954_v40  ;;  %v1957_v52 = vadd.f32 %v3249_v11, %v3181_v47  ;;  %3474 = vrot.lane.b32.xlu1 %v3473_v42, %s3679_s30  ;;  %v1391_v62 = vpop.f32.mrb[35].mxu1  ;;  %v1964_v63 = vpop.f32.mrb[39].mxu0 }
 0x146   : > { %v2111_v0 = vmul.f32 %v4063_v6, %v1946_v46  ;;  %v1949_v1 = vadd.f32 %v1948_v15, %v1391_v62  ;;  %3479 = vrot.lane.b32.xlu0 %v3478_v49, %s3679_s30 }
 0x147   : > { %v2114_v7 = vmul.f32 %v4063_v6, %v1957_v52  ;;  %v4251_v33 = vadd.f32 %v4069_v16, %v2113_v51 }
 0x148   : > { %v2112_v8 = vmul.f32 %v4063_v6, %v1949_v1  ;;  %v4257_v10 = vadd.f32 %v4069_v16, %v2111_v0 }
 0x149   : > { %v4254_v9 = vadd.f32 %v4069_v16, %v2114_v7 }
 0x14a   : > { %v4260_v11 = vadd.f32 %v4069_v16, %v2112_v8 }
 0x14b   : > { %v3184_v12 = vpop.f32.mrb[36].mxu1  ;;  %v3483_v13 = vpack.i.bf16 %v4254_v9, %v4251_v33  ;;  %v3256_v14 = vpop.f32.mrb[40].mxu0 }
 0x14c   : > { %v1970_v15 = vadd.f32 %v3252_v39, %v3184_v12  ;;  %v1404_v17 = vpop.f32.mrb[37].mxu1  ;;  %v3488_v18 = vpack.i.bf16 %v4260_v11, %v4257_v10  ;;  %v1977_v26 = vpop.f32.mrb[41].mxu0 }
 0x14d   : > { %v1962_v27 = vadd.f32 %v1961_v43, %v1404_v17  ;;  %v3185_v38 = vpop.f32.mrb[38].mxu1  ;;  %3484 = vrot.lane.b32.xlu1 %v3483_v13, %s3679_s30  ;;  %v3257_v40 = vpop.f32.mrb[42].mxu0 }
 0x14e   : > { %v2117_v41 = vmul.f32 %v4063_v6, %v1970_v15  ;;  %v1973_v42 = vadd.f32 %v3253_v50, %v3185_v38  ;;  %v1407_v46 = vpop.f32.mrb[39].mxu1  ;;  %3489 = vrot.lane.b32.xlu0 %v3488_v18, %s3679_s30  ;;  %v1980_v47 = vpop.f32.mrb[43].mxu0 }
 0x14f   : > { %v2115_v49 = vmul.f32 %v4063_v6, %v1962_v27  ;;  %v1965_v39 = vadd.f32 %v1964_v63, %v1407_v46 }
 0x150   : > { %v2118_v51 = vmul.f32 %v4063_v6, %v1973_v42  ;;  %v4273_v43 = vadd.f32 %v4069_v16, %v2117_v41 }
 0x151   : > { %v2116_v52 = vmul.f32 %v4063_v6, %v1965_v39  ;;  %v4279_v0 = vadd.f32 %v4069_v16, %v2115_v49 }
 0x152   : > { %v4276_v62 = vadd.f32 %v4069_v16, %v2118_v51 }
 0x153   : > { %v4282_v50 = vadd.f32 %v4069_v16, %v2116_v52  ;;  %v3188_v1 = vpop.f32.mrb[40].mxu1  ;;  %v3260_v7 = vpop.f32.mrb[44].mxu0 }
 0x154   : > { %v1986_v8 = vadd.f32 %v3256_v14, %v3188_v1  ;;  %v1420_v63 = vpop.f32.mrb[41].mxu1  ;;  %v3493_v12 = vpack.i.bf16 %v4276_v62, %v4273_v43  ;;  %v1993_v13 = vpop.f32.mrb[45].mxu0 }
 0x155   : > { %v1978_v15 = vadd.f32 %v1977_v26, %v1420_v63  ;;  %v3189_v17 = vpop.f32.mrb[42].mxu1  ;;  %v3498_v18 = vpack.i.bf16 %v4282_v50, %v4279_v0  ;;  %v3261_v27 = vpop.f32.mrb[46].mxu0 }
 0x156   : > { %v2121_v38 = vmul.f32 %v4063_v6, %v1986_v8  ;;  %v1989_v41 = vadd.f32 %v3257_v40, %v3189_v17  ;;  %3494 = vrot.lane.b32.xlu1 %v3493_v12, %s3679_s30  ;;  %v1423_v42 = vpop.f32.mrb[43].mxu1  ;;  %v1996_v46 = vpop.f32.mrb[47].mxu0 }
 0x157   : > { %v2119_v14 = vmul.f32 %v4063_v6, %v1978_v15  ;;  %v1981_v49 = vadd.f32 %v1980_v47, %v1423_v42  ;;  %3499 = vrot.lane.b32.xlu0 %v3498_v18, %s3679_s30 }
 0x158   : > { %v2122_v39 = vmul.f32 %v4063_v6, %v1989_v41  ;;  %v4295_v51 = vadd.f32 %v4069_v16, %v2121_v38 }
 0x159   : > { %v2120_v26 = vmul.f32 %v4063_v6, %v1981_v49  ;;  %v4301_v40 = vadd.f32 %v4069_v16, %v2119_v14 }
 0x15a   : > { %4639 = vst [vmem:[#allocation5_spill] sm:$0xff] %v4295_v51  ;;  %v4298_v52 = vadd.f32 %v4069_v16, %v2122_v39 }
 0x15b   : > { %4641 = vst [vmem:[#allocation7_spill] sm:$0xff] %v4301_v40  ;;  %v4304_v1 = vadd.f32 %v4069_v16, %v2120_v26 }
 0x15c   : > { %4640 = vst [vmem:[#allocation6_spill] sm:$0xff] %v4298_v52  ;;  %v3192_v8 = vpop.f32.mrb[44].mxu1  ;;  %v3503_v47 = vpack.i.bf16 %v4298_v52, %v4295_v51  ;;  %v3264_v63 = vpop.f32.mrb[48].mxu0 }
 0x15d   : > { %4642 = vst [vmem:[#allocation8_spill] sm:$0xff] %v4304_v1  ;;  %v2002_v12 = vadd.f32 %v3260_v7, %v3192_v8  ;;  %v1436_v15 = vpop.f32.mrb[45].mxu1  ;;  %v3508_v17 = vpack.i.bf16 %v4304_v1, %v4301_v40  ;;  %v2009_v18 = vpop.f32.mrb[49].mxu0 }
 0x15e   : > { %v1994_v38 = vadd.f32 %v1993_v13, %v1436_v15  ;;  %v3193_v41 = vpop.f32.mrb[46].mxu1  ;;  %3504 = vrot.lane.b32.xlu1 %v3503_v47, %s3679_s30  ;;  %v3265_v42 = vpop.f32.mrb[50].mxu0 }
 0x15f   : > { %v2125_v14 = vmul.f32 %v4063_v6, %v2002_v12  ;;  %v2005_v49 = vadd.f32 %v3261_v27, %v3193_v41  ;;  %v1439_v39 = vpop.f32.mrb[47].mxu1  ;;  %3509 = vrot.lane.b32.xlu0 %v3508_v17, %s3679_s30  ;;  %v2012_v26 = vpop.f32.mrb[51].mxu0 }
 0x160   : > { %v2123_v51 = vmul.f32 %v4063_v6, %v1994_v38  ;;  %v1997_v7 = vadd.f32 %v1996_v46, %v1439_v39 }
 0x161   : > { %v2126_v8 = vmul.f32 %v4063_v6, %v2005_v49  ;;  %v4317_v13 = vadd.f32 %v4069_v16, %v2125_v14 }
 0x162   : > { %v2124_v40 = vmul.f32 %v4063_v6, %v1997_v7  ;;  %v4323_v12 = vadd.f32 %v4069_v16, %v2123_v51 }
 0x163   : > { %4643 = vst [vmem:[#allocation9_spill] sm:$0xff] %v4317_v13  ;;  %v4320_v47 = vadd.f32 %v4069_v16, %v2126_v8 }
 0x164   : > { %4645 = vst [vmem:[#allocation11_spill] sm:$0xff] %v4323_v12  ;;  %v4326_v27 = vadd.f32 %v4069_v16, %v2124_v40  ;;  %v3196_v15 = vpop.f32.mrb[48].mxu1  ;;  %v3268_v17 = vpop.f32.mrb[52].mxu0 }
 0x165   : > { %4644 = vst [vmem:[#allocation10_spill] sm:$0xff] %v4320_v47  ;;  %v2018_v38 = vadd.f32 %v3264_v63, %v3196_v15  ;;  %v1452_v46 = vpop.f32.mrb[49].mxu1  ;;  %v3513_v41 = vpack.i.bf16 %v4320_v47, %v4317_v13  ;;  %v2025_v49 = vpop.f32.mrb[53].mxu0 }
 0x166   : > { %4646 = vst [vmem:[#allocation12_spill] sm:$0xff] %v4326_v27  ;;  %v2010_v39 = vadd.f32 %v2009_v18, %v1452_v46  ;;  %v3197_v14 = vpop.f32.mrb[50].mxu1  ;;  %v3518_v7 = vpack.i.bf16 %v4326_v27, %v4323_v12  ;;  %v3269_v8 = vpop.f32.mrb[54].mxu0 }
 0x167   : > { %v2129_v51 = vmul.f32 %v4063_v6, %v2018_v38  ;;  %v2021_v1 = vadd.f32 %v3265_v42, %v3197_v14  ;;  %3514 = vrot.lane.b32.xlu1 %v3513_v41, %s3679_s30  ;;  %v1455_v40 = vpop.f32.mrb[51].mxu1  ;;  %v2028_v52 = vpop.f32.mrb[55].mxu0 }
 0x168   : > { %v2127_v63 = vmul.f32 %v4063_v6, %v2010_v39  ;;  %v2013_v15 = vadd.f32 %v2012_v26, %v1455_v40  ;;  %3519 = vrot.lane.b32.xlu0 %v3518_v7, %s3679_s30 }
 0x169   : > { %v2130_v13 = vmul.f32 %v4063_v6, %v2021_v1  ;;  %v4339_v46 = vadd.f32 %v4069_v16, %v2129_v51 }
 0x16a   : > { %v2128_v18 = vmul.f32 %v4063_v6, %v2013_v15  ;;  %v4345_v42 = vadd.f32 %v4069_v16, %v2127_v63 }
 0x16b   : > { %4647 = vst [vmem:[#allocation13_spill] sm:$0xff] %v4339_v46  ;;  %v4342_v12 = vadd.f32 %v4069_v16, %v2130_v13 }
 0x16c   : > { %4649 = vst [vmem:[#allocation15_spill] sm:$0xff] %v4345_v42  ;;  %v4348_v38 = vadd.f32 %v4069_v16, %v2128_v18 }
 0x16d   : > { %4648 = vst [vmem:[#allocation14_spill] sm:$0xff] %v4342_v12  ;;  %v3200_v41 = vpop.f32.mrb[52].mxu1  ;;  %v3523_v26 = vpack.i.bf16 %v4342_v12, %v4339_v46  ;;  %v3272_v39 = vpop.f32.mrb[56].mxu0 }
 0x16e   : > { %4650 = vst [vmem:[#allocation16_spill] sm:$0xff] %v4348_v38  ;;  %v2034_v1 = vadd.f32 %v3268_v17, %v3200_v41  ;;  %v1468_v14 = vpop.f32.mrb[53].mxu1  ;;  %v3528_v7 = vpack.i.bf16 %v4348_v38, %v4345_v42  ;;  %v2041_v51 = vpop.f32.mrb[57].mxu0 }
 0x16f   : > { %v2026_v40 = vadd.f32 %v2025_v49, %v1468_v14  ;;  %v3201_v13 = vpop.f32.mrb[54].mxu1  ;;  %3524 = vrot.lane.b32.xlu1 %v3523_v26, %s3679_s30  ;;  %v3273_v63 = vpop.f32.mrb[58].mxu0 }
 0x170   : > { %v2133_v15 = vmul.f32 %v4063_v6, %v2034_v1  ;;  %v2037_v18 = vadd.f32 %v3269_v8, %v3201_v13  ;;  %v1471_v27 = vpop.f32.mrb[55].mxu1  ;;  %3529 = vrot.lane.b32.xlu0 %v3528_v7, %s3679_s30  ;;  %v2044_v47 = vpop.f32.mrb[59].mxu0 }
 0x171   : > { %v2131_v46 = vmul.f32 %v4063_v6, %v2026_v40  ;;  %v2029_v17 = vadd.f32 %v2028_v52, %v1471_v27 }
 0x172   : > { %v2134_v41 = vmul.f32 %v4063_v6, %v2037_v18  ;;  %v4361_v49 = vadd.f32 %v4069_v16, %v2133_v15 }
 0x173   : > { %v2132_v42 = vmul.f32 %v4063_v6, %v2029_v17  ;;  %v4367_v1 = vadd.f32 %v4069_v16, %v2131_v46 }
 0x174   : > { %4651 = vst [vmem:[#allocation17_spill] sm:$0xff] %v4361_v49  ;;  %v4364_v26 = vadd.f32 %v4069_v16, %v2134_v41 }
 0x175   : > { %4652 = vst [vmem:[#allocation18_spill] sm:$0xff] %v4367_v1  ;;  %v4370_v8 = vadd.f32 %v4069_v16, %v2132_v42  ;;  %v3204_v14 = vpop.f32.mrb[56].mxu1  ;;  %v3276_v7 = vpop.f32.mrb[60].mxu0 }
 0x176   : > { %v2050_v40 = vadd.f32 %v3272_v39, %v3204_v14  ;;  %v1484_v52 = vpop.f32.mrb[57].mxu1  ;;  %v3533_v27 = vpack.i.bf16 %v4364_v26, %v4361_v49  ;;  %v2057_v13 = vpop.f32.mrb[61].mxu0 }
 0x177   : > { %4653 = vst [vmem:[#allocation19_spill] sm:$0xff] %v4370_v8  ;;  %v2042_v18 = vadd.f32 %v2041_v51, %v1484_v52  ;;  %v3205_v15 = vpop.f32.mrb[58].mxu1  ;;  %v3538_v17 = vpack.i.bf16 %v4370_v8, %v4367_v1  ;;  %v3277_v41 = vpop.f32.mrb[62].mxu0 }
 0x178   : > { %v2137_v46 = vmul.f32 %v4063_v6, %v2050_v40  ;;  %v2053_v38 = vadd.f32 %v3273_v63, %v3205_v15  ;;  %3534 = vrot.lane.b32.xlu1 %v3533_v27, %s3679_s30  ;;  %v1487_v42 = vpop.f32.mrb[59].mxu1  ;;  %v2060_v12 = vpop.f32.mrb[63].mxu0 }
 0x179   : > { %v2135_v39 = vmul.f32 %v4063_v6, %v2042_v18  ;;  %v2045_v14 = vadd.f32 %v2044_v47, %v1487_v42  ;;  %3539 = vrot.lane.b32.xlu0 %v3538_v17, %s3679_s30 }
 0x17a   : > { %v2138_v49 = vmul.f32 %v4063_v6, %v2053_v38  ;;  %v4383_v52 = vadd.f32 %v4069_v16, %v2137_v46 }
 0x17b   : > { %v2136_v51 = vmul.f32 %v4063_v6, %v2045_v14  ;;  %v4389_v63 = vadd.f32 %v4069_v16, %v2135_v39 }
 0x17c   : > { %4654 = vst [vmem:[#allocation20_spill] sm:$0xff] %v4383_v52  ;;  %v4386_v1 = vadd.f32 %v4069_v16, %v2138_v49  ;;  %v3405_v27 = vpop.permute.xlu0 %3404 }
 0x17d   : > { %4656 = vst [vmem:[#allocation22_spill] sm:$0xff] %v4389_v63  ;;  %v4392_v40 = vadd.f32 %v4069_v16, %v2136_v51  ;;  %v3407_v49 = vunpack.i.h.bf16 %v3405_v27 }
 0x17e   : > { %4655 = vst [vmem:[#allocation21_spill] sm:$0xff] %v4386_v1  ;;  %v3208_v47 = vpop.f32.mrb[60].mxu1  ;;  %v3543_v18 = vpack.i.bf16 %v4386_v1, %v4383_v52 }
 0x17f   : > { %v2066_v38 = vadd.f32 %v3276_v7, %v3208_v47  ;;  %v1500_v15 = vpop.f32.mrb[61].mxu1  ;;  %v3548_v17 = vpack.i.bf16 %v4392_v40, %v4389_v63  ;;  %v3406_v47 = vunpack.i.l.bf16 %v3405_v27 }
 0x180   : > { %v2058_v46 = vadd.f32 %v2057_v13, %v1500_v15  ;;  %v3209_v42 = vpop.f32.mrb[62].mxu1  ;;  %3544 = vrot.lane.b32.xlu1 %v3543_v18, %s3679_s30  ;;  %v3410_v1 = vpop.permute.xlu0 %3409  ;;  %v2473_v15 = vmax.f32 %v4078_v22, %v3407_v49 }
 0x181   : > { %v2141_v39 = vmul.f32 %v4063_v6, %v2066_v38  ;;  %v2069_v14 = vadd.f32 %v3277_v41, %v3209_v42  ;;  %v1503_v51 = vpop.f32.mrb[63].mxu1  ;;  %3549 = vrot.lane.b32.xlu0 %v3548_v17, %s3679_s30  ;;  %v2472_v22 = vmax.f32 %v4075_v21, %v3406_v47 }
 0x182   : > { %v2139_v8 = vmul.f32 %v4063_v6, %v2058_v46  ;;  %v2061_v52 = vadd.f32 %v2060_v12, %v1503_v51  ;;  %v3412_v46 = vunpack.i.h.bf16 %v3410_v1 }
 0x183   : > { %v2142_v7 = vmul.f32 %v4063_v6, %v2069_v14  ;;  %v4406_v63 = vadd.f32 %v4069_v16, %v2141_v39 }
 0x184   : > { %v2140_v13 = vmul.f32 %v4063_v6, %v2061_v52  ;;  %v3415_v18 = vpop.permute.xlu1 %3414  ;;  %v4412_v12 = vadd.f32 %v4069_v16, %v2139_v8  ;;  %v3411_v6 = vunpack.i.l.bf16 %v3410_v1  ;;  %v2471_v21 = vmax.f32 %v4081_v25, %v3412_v46 }
 0x185   : > { %v4409_v41 = vadd.f32 %v4069_v16, %v2142_v7  ;;  %v3417_v38 = vunpack.i.h.bf16 %v3415_v18  ;;  %v3416_v17 = vunpack.i.l.bf16 %v3415_v18 }
 0x186   : > { %v4415_v27 = vadd.f32 %v4069_v16, %v2140_v13  ;;  %v2470_v7 = vmax.f32 %v4086_v34, %v3411_v6 }
 0x187   : > { %v3558_v52 = vpack.i.bf16 %v4409_v41, %v4406_v63  ;;  %v2477_v42 = vmax.f32 %v4100_v45, %v3417_v38  ;;  %v2476_v49 = vmax.f32 %v4097_v44, %v3416_v17 }
 0x188   : > { %v3553_v39 = vpack.i.bf16 %v4415_v27, %v4412_v12  ;;  %v3420_v8 = vpop.permute.xlu1 %3419 }
 0x189   : > { %3559 = vrot.lane.b32.xlu1 %v3558_v52, %s3679_s30  ;;  %v2537_v16 = vmax.f32 %v2473_v15, %v2477_v42  ;;  %v2536_v1 = vmax.f32 %v2472_v22, %v2476_v49  ;;  %v3422_v14 = vunpack.i.h.bf16 %v3420_v8  ;;  %v3421_v51 = vunpack.i.l.bf16 %v3420_v8 }
 0x18a   : > { %3554 = vrot.lane.b32.xlu0 %v3553_v39, %s3679_s30 }
 0x18b   : > { %v2569_v45 = vmax.f32 %v2537_v16, 0.0  ;;  %v2568_v44 = vmax.f32 %v2536_v1, 0.0  ;;  %v2475_v47 = vmax.f32 %v4103_v48, %v3422_v14  ;;  %v2474_v13 = vmax.f32 %v4108_v56, %v3421_v51 }
 0x18c   : > { %v3425_v56 = vpop.permute.xlu1 %3424 }
 0x18d   : > { %v3043_v18 = vpack.c.bf16 %v2569_v45, %v2569_v45  ;;  %v3042_v15 = vpack.c.bf16 %v2568_v44, %v2568_v44  ;;  %v2535_v38 = vmax.f32 %v2471_v21, %v2475_v47  ;;  %v2534_v17 = vmax.f32 %v2470_v7, %v2474_v13  ;;  %v3430_v6 = vpop.permute.xlu0 %3429 }
 0x18e   : > { %v3427_v22 = vunpack.i.h.bf16 %v3425_v56  ;;  %v3426_v52 = vunpack.i.l.bf16 %v3425_v56  ;;  %v3432_v42 = vunpack.i.h.bf16 %v3430_v6  ;;  %v3431_v49 = vunpack.i.l.bf16 %v3430_v6 }
 0x18f   : > { %2729 = vst.msk [vmem:[%s4433_s7 + $0x8] sm:$0xf] %vm2726_vm5, %v3042_v15  ;;  %2730 = vst.msk [vmem:[%s4433_s7 + $0xc] sm:$0xf] %vm2726_vm5, %v3043_v18  ;;  %v2567_v25 = vmax.f32 %v2535_v38, 0.0  ;;  %v2566_v34 = vmax.f32 %v2534_v17, 0.0 }
 0x190   : > { %v2481_v21 = vmax.f32 %v4121_v3, %v3427_v22  ;;  %v2480_v7 = vmax.f32 %v4118_v2, %v3426_v52  ;;  %v2479_v47 = vmax.f32 %v4128_v5, %v3432_v42  ;;  %v2478_v13 = vmax.f32 %v4125_v4, %v3431_v49 }
 0x191   : > { %v3041_v48 = vpack.c.bf16 %v2567_v25, %v2567_v25  ;;  %v3040_v46 = vpack.c.bf16 %v2566_v34, %v2566_v34 }
 0x193   : > { %2727 = vst.msk [vmem:[%s4433_s7] sm:$0xf] %vm2726_vm5, %v3040_v46  ;;  %2728 = vst.msk [vmem:[%s4433_s7 + $0x4] sm:$0xf] %vm2726_vm5, %v3041_v48 }
 0x195   : > { %v3435_v39 = vpop.permute.xlu1 %3434 }
 0x196   : > { %v3437_v8 = vunpack.i.h.bf16 %v3435_v39  ;;  %v3436_v16 = vunpack.i.l.bf16 %v3435_v39  ;;  %v3440_v1 = vpop.permute.xlu0 %3439 }
 0x197   : > { %v3442_v14 = vunpack.i.h.bf16 %v3440_v1  ;;  %v3441_v51 = vunpack.i.l.bf16 %v3440_v1 }
 0x198   : > { %v2485_v45 = vmax.f32 %v4144_v29, %v3437_v8  ;;  %v2484_v44 = vmax.f32 %v4141_v28, %v3436_v16 }
 0x199   : > { %v2483_v18 = vmax.f32 %v4150_v31, %v3442_v14  ;;  %v2482_v15 = vmax.f32 %v4147_v30, %v3441_v51 }
 0x19a   : > { %v2541_v38 = vmax.f32 %v2481_v21, %v2485_v45  ;;  %v2540_v3 = vmax.f32 %v2480_v7, %v2484_v44 }
 0x19b   : > { %v2539_v17 = vmax.f32 %v2479_v47, %v2483_v18  ;;  %v2538_v2 = vmax.f32 %v2478_v13, %v2482_v15 }
 0x19c   : > { %v2573_v25 = vmax.f32 %v2541_v38, 0.0  ;;  %v2572_v29 = vmax.f32 %v2540_v3, 0.0 }
 0x19d   : > { %v2571_v34 = vmax.f32 %v2539_v17, 0.0  ;;  %v2570_v28 = vmax.f32 %v2538_v2, 0.0  ;;  %v3445_v4 = vpop.permute.xlu1 %3444 }
 0x19e   : > { %v3047_v48 = vpack.c.bf16 %v2573_v25, %v2573_v25  ;;  %v3046_v5 = vpack.c.bf16 %v2572_v29, %v2572_v29  ;;  %v3450_v30 = vpop.permute.xlu0 %3449  ;;  %v3447_v31 = vunpack.i.h.bf16 %v3445_v4  ;;  %v3446_v6 = vunpack.i.l.bf16 %v3445_v4 }
 0x19f   : > { %v3045_v46 = vpack.c.bf16 %v2571_v34, %v2571_v34  ;;  %v3044_v56 = vpack.c.bf16 %v2570_v28, %v2570_v28  ;;  %v3452_v22 = vunpack.i.h.bf16 %v3450_v30  ;;  %v3451_v52 = vunpack.i.l.bf16 %v3450_v30 }
 0x1a0   : > { %2733 = vst.msk [vmem:[%s4433_s7 + $0x18] sm:$0xf] %vm2726_vm5, %v3046_v5  ;;  %2734 = vst.msk [vmem:[%s4433_s7 + $0x1c] sm:$0xf] %vm2726_vm5, %v3047_v48  ;;  %v2489_v14 = vmax.f32 %v4166_v57, %v3447_v31  ;;  %v2488_v51 = vmax.f32 %v4163_v55, %v3446_v6 }
 0x1a1   : > { %2731 = vst.msk [vmem:[%s4433_s7 + $0x10] sm:$0xf] %vm2726_vm5, %v3044_v56  ;;  %2732 = vst.msk [vmem:[%s4433_s7 + $0x14] sm:$0xf] %vm2726_vm5, %v3045_v46  ;;  %v2487_v45 = vmax.f32 %v4172_v59, %v3452_v22  ;;  %v2486_v44 = vmax.f32 %v4169_v58, %v3451_v52 }
 0x1a6   : > { %v3455_v42 = vpop.permute.xlu1 %3454 }
 0x1a7   : > { %v3457_v49 = vunpack.i.h.bf16 %v3455_v42  ;;  %v3456_v39 = vunpack.i.l.bf16 %v3455_v42  ;;  %v3460_v8 = vpop.permute.xlu0 %3459 }
 0x1a8   : > { %v3462_v16 = vunpack.i.h.bf16 %v3460_v8  ;;  %v3461_v1 = vunpack.i.l.bf16 %v3460_v8 }
 0x1a9   : > { %v2493_v21 = vmax.f32 %v4188_v20, %v3457_v49  ;;  %v2492_v7 = vmax.f32 %v4185_v19, %v3456_v39 }
 0x1aa   : > { %v2491_v47 = vmax.f32 %v4194_v24, %v3462_v16  ;;  %v2490_v13 = vmax.f32 %v4191_v23, %v3461_v1 }
 0x1ab   : > { %v2545_v18 = vmax.f32 %v2489_v14, %v2493_v21  ;;  %v2544_v57 = vmax.f32 %v2488_v51, %v2492_v7 }
 0x1ac   : > { %v2543_v15 = vmax.f32 %v2487_v45, %v2491_v47  ;;  %v2542_v55 = vmax.f32 %v2486_v44, %v2490_v13 }
 0x1ad   : > { %v2577_v38 = vmax.f32 %v2545_v18, 0.0  ;;  %v2576_v20 = vmax.f32 %v2544_v57, 0.0 }
 0x1ae   : > { %v2575_v3 = vmax.f32 %v2543_v15, 0.0  ;;  %v2574_v19 = vmax.f32 %v2542_v55, 0.0  ;;  %v3465_v58 = vpop.permute.xlu1 %3464 }
 0x1af   : > { %v3051_v17 = vpack.c.bf16 %v2577_v38, %v2577_v38  ;;  %v3050_v59 = vpack.c.bf16 %v2576_v20, %v2576_v20  ;;  %v3470_v23 = vpop.permute.xlu0 %3469  ;;  %v3467_v24 = vunpack.i.h.bf16 %v3465_v58  ;;  %v3466_v29 = vunpack.i.l.bf16 %v3465_v58 }
 0x1b0   : > { %v3049_v2 = vpack.c.bf16 %v2575_v3, %v2575_v3  ;;  %v3048_v25 = vpack.c.bf16 %v2574_v19, %v2574_v19  ;;  %v3472_v34 = vunpack.i.h.bf16 %v3470_v23  ;;  %v3471_v28 = vunpack.i.l.bf16 %v3470_v23 }
 0x1b1   : > { %2737 = vst.msk [vmem:[%s4433_s7 + $0x28] sm:$0xf] %vm2726_vm5, %v3050_v59  ;;  %2738 = vst.msk [vmem:[%s4433_s7 + $0x2c] sm:$0xf] %vm2726_vm5, %v3051_v17  ;;  %v2497_v31 = vmax.f32 %v4210_v54, %v3467_v24  ;;  %v2496_v6 = vmax.f32 %v4207_v53, %v3466_v29 }
 0x1b2   : > { %2735 = vst.msk [vmem:[%s4433_s7 + $0x20] sm:$0xf] %vm2726_vm5, %v3048_v25  ;;  %2736 = vst.msk [vmem:[%s4433_s7 + $0x24] sm:$0xf] %vm2726_vm5, %v3049_v2  ;;  %v2495_v42 = vmax.f32 %v4216_v61, %v3472_v34  ;;  %v2494_v49 = vmax.f32 %v4213_v60, %v3471_v28 }
 0x1b7   : > { %v3475_v48 = vpop.permute.xlu1 %3474 }
 0x1b8   : > { %v3477_v5 = vunpack.i.h.bf16 %v3475_v48  ;;  %v3476_v46 = vunpack.i.l.bf16 %v3475_v48  ;;  %v3480_v56 = vpop.permute.xlu0 %3479 }
 0x1b9   : > { %v3482_v4 = vunpack.i.h.bf16 %v3480_v56  ;;  %v3481_v30 = vunpack.i.l.bf16 %v3480_v56 }
 0x1ba   : > { %v2501_v22 = vmax.f32 %v4232_v35, %v3477_v5  ;;  %v2500_v52 = vmax.f32 %v4229_v32, %v3476_v46 }
 0x1bb   : > { %v2499_v39 = vmax.f32 %v4238_v37, %v3482_v4  ;;  %v2498_v8 = vmax.f32 %v4235_v36, %v3481_v30 }
 0x1bc   : > { %v2549_v16 = vmax.f32 %v2497_v31, %v2501_v22  ;;  %v2548_v54 = vmax.f32 %v2496_v6, %v2500_v52 }
 0x1bd   : > { %v2547_v1 = vmax.f32 %v2495_v42, %v2499_v39  ;;  %v2546_v53 = vmax.f32 %v2494_v49, %v2498_v8  ;;  %v4657_v39 = vld [vmem:[#allocation6_spill] sm:$0xff] }
 0x1be   : > { %v2581_v14 = vmax.f32 %v2549_v16, 0.0  ;;  %v2580_v35 = vmax.f32 %v2548_v54, 0.0  ;;  %v4658_v16 = vld [vmem:[#allocation5_spill] sm:$0xff] }
 0x1bf   : > { %v2579_v51 = vmax.f32 %v2547_v1, 0.0  ;;  %v2578_v32 = vmax.f32 %v2546_v53, 0.0  ;;  %v3485_v60 = vpop.permute.xlu1 %3484  ;;  %v4659_v1 = vld [vmem:[#allocation10_spill] sm:$0xff] }
 0x1c0   : > { %v3055_v21 = vpack.c.bf16 %v2581_v14, %v2581_v14  ;;  %v3054_v61 = vpack.c.bf16 %v2580_v35, %v2580_v35  ;;  %v3490_v36 = vpop.permute.xlu0 %3489  ;;  %v3487_v37 = vunpack.i.h.bf16 %v3485_v60  ;;  %v3486_v44 = vunpack.i.l.bf16 %v3485_v60  ;;  %v4660_v14 = vld [vmem:[#allocation9_spill] sm:$0xff]  ;;  %v4664_v60 = vld [vmem:[#allocation11_spill] sm:$0xff] }
 0x1c1   : > { %v3053_v7 = vpack.c.bf16 %v2579_v51, %v2579_v51  ;;  %v3052_v45 = vpack.c.bf16 %v2578_v32, %v2578_v32  ;;  %v3492_v47 = vunpack.i.h.bf16 %v3490_v36  ;;  %v3491_v13 = vunpack.i.l.bf16 %v3490_v36  ;;  %v4661_v51 = vld [vmem:[#allocation8_spill] sm:$0xff] }
 0x1c2   : > { %2741 = vst.msk [vmem:[%s4433_s7 + $0x38] sm:$0xf] %vm2726_vm5, %v3054_v61  ;;  %2742 = vst.msk [vmem:[%s4433_s7 + $0x3c] sm:$0xf] %vm2726_vm5, %v3055_v21  ;;  %v2505_v3 = vmax.f32 %v4254_v9, %v3487_v37  ;;  %v2504_v19 = vmax.f32 %v4251_v33, %v3486_v44  ;;  %v4662_v21 = vld [vmem:[#allocation7_spill] sm:$0xff] }
 0x1c3   : > { %2739 = vst.msk [vmem:[%s4433_s7 + $0x30] sm:$0xf] %vm2726_vm5, %v3052_v45  ;;  %2740 = vst.msk [vmem:[%s4433_s7 + $0x34] sm:$0xf] %vm2726_vm5, %v3053_v7  ;;  %v2503_v2 = vmax.f32 %v4260_v11, %v3492_v47  ;;  %v2502_v25 = vmax.f32 %v4257_v10, %v3491_v13  ;;  %v4663_v7 = vld [vmem:[#allocation12_spill] sm:$0xff] }
 0x1c8   : > { %v3495_v18 = vpop.permute.xlu1 %3494 }
 0x1c9   : > { %v3497_v57 = vunpack.i.h.bf16 %v3495_v18  ;;  %v3496_v15 = vunpack.i.l.bf16 %v3495_v18  ;;  %v3500_v55 = vpop.permute.xlu0 %3499 }
 0x1ca   : > { %v3502_v38 = vunpack.i.h.bf16 %v3500_v55  ;;  %v3501_v20 = vunpack.i.l.bf16 %v3500_v55 }
 0x1cb   : > { %v2509_v17 = vmax.f32 %v4276_v62, %v3497_v57  ;;  %v2508_v59 = vmax.f32 %v4273_v43, %v3496_v15 }
 0x1cc   : > { %v2507_v58 = vmax.f32 %v4282_v50, %v3502_v38  ;;  %v2506_v23 = vmax.f32 %v4279_v0, %v3501_v20 }
 0x1cd   : > { %v2553_v24 = vmax.f32 %v2505_v3, %v2509_v17  ;;  %v2552_v9 = vmax.f32 %v2504_v19, %v2508_v59 }
 0x1ce   : > { %v2551_v29 = vmax.f32 %v2503_v2, %v2507_v58  ;;  %v2550_v33 = vmax.f32 %v2502_v25, %v2506_v23 }
 0x1cf   : > { %v2585_v34 = vmax.f32 %v2553_v24, 0.0  ;;  %v2584_v62 = vmax.f32 %v2552_v9, 0.0 }
 0x1d0   : > { %v2583_v28 = vmax.f32 %v2551_v29, 0.0  ;;  %v2582_v43 = vmax.f32 %v2550_v33, 0.0  ;;  %v3505_v10 = vpop.permute.xlu1 %3504 }
 0x1d1   : > { %v3059_v48 = vpack.c.bf16 %v2585_v34, %v2585_v34  ;;  %v3058_v11 = vpack.c.bf16 %v2584_v62, %v2584_v62  ;;  %v3510_v0 = vpop.permute.xlu0 %3509  ;;  %v3507_v50 = vunpack.i.h.bf16 %v3505_v10  ;;  %v3506_v56 = vunpack.i.l.bf16 %v3505_v10 }
 0x1d2   : > { %v3057_v5 = vpack.c.bf16 %v2583_v28, %v2583_v28  ;;  %v3056_v46 = vpack.c.bf16 %v2582_v43, %v2582_v43  ;;  %v3512_v4 = vunpack.i.h.bf16 %v3510_v0  ;;  %v3511_v30 = vunpack.i.l.bf16 %v3510_v0  ;;  %v4665_v28 = vld [vmem:[#allocation14_spill] sm:$0xff]  ;;  %v4668_v0 = vld [vmem:[#allocation16_spill] sm:$0xff] }
 0x1d3   : > { %2745 = vst.msk [vmem:[%s4433_s7 + $0x48] sm:$0xf] %vm2726_vm5, %v3058_v11  ;;  %2746 = vst.msk [vmem:[%s4433_s7 + $0x4c] sm:$0xf] %vm2726_vm5, %v3059_v48  ;;  %v2513_v8 = vmax.f32 %v4657_v39, %v3507_v50  ;;  %v2512_v54 = vmax.f32 %v4658_v16, %v3506_v56  ;;  %v4666_v48 = vld [vmem:[#allocation13_spill] sm:$0xff]  ;;  %v4669_v56 = vld [vmem:[#allocation15_spill] sm:$0xff] }
 0x1d4   : > { %2743 = vst.msk [vmem:[%s4433_s7 + $0x40] sm:$0xf] %vm2726_vm5, %v3056_v46  ;;  %2744 = vst.msk [vmem:[%s4433_s7 + $0x44] sm:$0xf] %vm2726_vm5, %v3057_v5  ;;  %v2511_v32 = vmax.f32 %v4661_v51, %v3512_v4  ;;  %v2510_v61 = vmax.f32 %v4662_v21, %v3511_v30  ;;  %v4667_v46 = vld [vmem:[#allocation17_spill] sm:$0xff]  ;;  %v4670_v30 = vld [vmem:[#allocation19_spill] sm:$0xff] }
 0x1d9   : > { %v3515_v31 = vpop.permute.xlu1 %3514 }
 0x1da   : > { %v3517_v6 = vunpack.i.h.bf16 %v3515_v31  ;;  %v3516_v22 = vunpack.i.l.bf16 %v3515_v31  ;;  %v3520_v52 = vpop.permute.xlu0 %3519 }
 0x1db   : > { %v3522_v42 = vunpack.i.h.bf16 %v3520_v52  ;;  %v3521_v49 = vunpack.i.l.bf16 %v3520_v52 }
 0x1dc   : > { %v2517_v53 = vmax.f32 %v4659_v1, %v3517_v6  ;;  %v2516_v35 = vmax.f32 %v4660_v14, %v3516_v22  ;;  %v4671_v6 = vld [vmem:[#allocation18_spill] sm:$0xff] }
 0x1dd   : > { %v2515_v45 = vmax.f32 %v4663_v7, %v3522_v42  ;;  %v2514_v36 = vmax.f32 %v4664_v60, %v3521_v49 }
 0x1de   : > { %v2557_v37 = vmax.f32 %v2513_v8, %v2517_v53  ;;  %v2556_v44 = vmax.f32 %v2512_v54, %v2516_v35 }
 0x1df   : > { %v2555_v47 = vmax.f32 %v2511_v32, %v2515_v45  ;;  %v2554_v13 = vmax.f32 %v2510_v61, %v2514_v36 }
 0x1e0   : > { %v2589_v18 = vmax.f32 %v2557_v37, 0.0  ;;  %v2588_v57 = vmax.f32 %v2556_v44, 0.0 }
 0x1e1   : > { %v2587_v15 = vmax.f32 %v2555_v47, 0.0  ;;  %v2586_v55 = vmax.f32 %v2554_v13, 0.0  ;;  %v3525_v17 = vpop.permute.xlu1 %3524 }
 0x1e2   : > { %v3063_v38 = vpack.c.bf16 %v2589_v18, %v2589_v18  ;;  %v3062_v20 = vpack.c.bf16 %v2588_v57, %v2588_v57  ;;  %v3530_v59 = vpop.permute.xlu0 %3529  ;;  %v3527_v2 = vunpack.i.h.bf16 %v3525_v17  ;;  %v3526_v25 = vunpack.i.l.bf16 %v3525_v17  ;;  %v4672_v18 = vld [vmem:[#allocation21_spill] sm:$0xff] }
 0x1e3   : > { %v3061_v3 = vpack.c.bf16 %v2587_v15, %v2587_v15  ;;  %v3060_v19 = vpack.c.bf16 %v2586_v55, %v2586_v55  ;;  %v3532_v58 = vunpack.i.h.bf16 %v3530_v59  ;;  %v3531_v23 = vunpack.i.l.bf16 %v3530_v59  ;;  %v4673_v15 = vld [vmem:[#allocation20_spill] sm:$0xff] }
 0x1e4   : > { %2749 = vst.msk [vmem:[%s4433_s7 + $0x58] sm:$0xf] %vm2726_vm5, %v3062_v20  ;;  %2750 = vst.msk [vmem:[%s4433_s7 + $0x5c] sm:$0xf] %vm2726_vm5, %v3063_v38  ;;  %v2521_v43 = vmax.f32 %v4665_v28, %v3527_v2  ;;  %v2520_v11 = vmax.f32 %v4666_v48, %v3526_v25 }
 0x1e5   : > { %2747 = vst.msk [vmem:[%s4433_s7 + $0x50] sm:$0xf] %vm2726_vm5, %v3060_v19  ;;  %2748 = vst.msk [vmem:[%s4433_s7 + $0x54] sm:$0xf] %vm2726_vm5, %v3061_v3  ;;  %v2519_v50 = vmax.f32 %v4668_v0, %v3532_v58  ;;  %v2518_v4 = vmax.f32 %v4669_v56, %v3531_v23  ;;  %v4674_v19 = vld [vmem:[#allocation22_spill] sm:$0xff] }
 0x1ea   : > { %v3535_v24 = vpop.permute.xlu1 %3534 }
 0x1eb   : > { %v3537_v9 = vunpack.i.h.bf16 %v3535_v24  ;;  %v3536_v29 = vunpack.i.l.bf16 %v3535_v24  ;;  %v3540_v33 = vpop.permute.xlu0 %3539 }
 0x1ec   : > { %v3542_v34 = vunpack.i.h.bf16 %v3540_v33  ;;  %v3541_v62 = vunpack.i.l.bf16 %v3540_v33 }
 0x1ed   : > { %v2525_v5 = vmax.f32 %v4364_v26, %v3537_v9  ;;  %v2524_v10 = vmax.f32 %v4667_v46, %v3536_v29 }
 0x1ee   : > { %v2523_v31 = vmax.f32 %v4670_v30, %v3542_v34  ;;  %v2522_v22 = vmax.f32 %v4671_v6, %v3541_v62 }
 0x1ef   : > { %v2561_v52 = vmax.f32 %v2521_v43, %v2525_v5  ;;  %v2560_v42 = vmax.f32 %v2520_v11, %v2524_v10 }
 0x1f0   : > { %v2559_v49 = vmax.f32 %v2519_v50, %v2523_v31  ;;  %v2558_v39 = vmax.f32 %v2518_v4, %v2522_v22 }
 0x1f1   : > { %v2593_v8 = vmax.f32 %v2561_v52, 0.0  ;;  %v2592_v26 = vmax.f32 %v2560_v42, 0.0 }
 0x1f2   : > { %v2591_v16 = vmax.f32 %v2559_v49, 0.0  ;;  %v2590_v54 = vmax.f32 %v2558_v39, 0.0  ;;  %v3545_v51 = vpop.permute.xlu1 %3544 }
 0x1f3   : > { %v3067_v1 = vpack.c.bf16 %v2593_v8, %v2593_v8  ;;  %v3066_v53 = vpack.c.bf16 %v2592_v26, %v2592_v26  ;;  %v3550_v32 = vpop.permute.xlu0 %3549  ;;  %v3547_v21 = vunpack.i.h.bf16 %v3545_v51  ;;  %v3546_v61 = vunpack.i.l.bf16 %v3545_v51 }
 0x1f4   : > { %v3065_v14 = vpack.c.bf16 %v2591_v16, %v2591_v16  ;;  %v3064_v35 = vpack.c.bf16 %v2590_v54, %v2590_v54  ;;  %v3552_v7 = vunpack.i.h.bf16 %v3550_v32  ;;  %v3551_v45 = vunpack.i.l.bf16 %v3550_v32 }
 0x1f5   : > { %2753 = vst.msk [vmem:[%s4433_s7 + $0x68] sm:$0xf] %vm2726_vm5, %v3066_v53  ;;  %2754 = vst.msk [vmem:[%s4433_s7 + $0x6c] sm:$0xf] %vm2726_vm5, %v3067_v1  ;;  %v2529_v57 = vmax.f32 %v4672_v18, %v3547_v21  ;;  %v2528_v55 = vmax.f32 %v4673_v15, %v3546_v61 }
 0x1f6   : > { %2751 = vst.msk [vmem:[%s4433_s7 + $0x60] sm:$0xf] %vm2726_vm5, %v3064_v35  ;;  %2752 = vst.msk [vmem:[%s4433_s7 + $0x64] sm:$0xf] %vm2726_vm5, %v3065_v14  ;;  %v2527_v3 = vmax.f32 %v4392_v40, %v3552_v7  ;;  %v2526_v17 = vmax.f32 %v4674_v19, %v3551_v45 }
 0x1fb   : > { %v3560_v60 = vpop.permute.xlu1 %3559 }
 0x1fc   : > { %v3562_v36 = vunpack.i.h.bf16 %v3560_v60  ;;  %v3561_v37 = vunpack.i.l.bf16 %v3560_v60  ;;  %v3555_v44 = vpop.permute.xlu0 %3554 }
 0x1fd   : > { %v3557_v47 = vunpack.i.h.bf16 %v3555_v44  ;;  %v3556_v13 = vunpack.i.l.bf16 %v3555_v44 }
 0x1fe   : > { %v2533_v38 = vmax.f32 %v4409_v41, %v3562_v36  ;;  %v2532_v20 = vmax.f32 %v4406_v63, %v3561_v37 }
 0x1ff   : > { %v2531_v59 = vmax.f32 %v4415_v27, %v3557_v47  ;;  %v2530_v2 = vmax.f32 %v4412_v12, %v3556_v13 }
 0x200   : > { %v2565_v25 = vmax.f32 %v2529_v57, %v2533_v38  ;;  %v2564_v58 = vmax.f32 %v2528_v55, %v2532_v20 }
 0x201   : > { %v2563_v23 = vmax.f32 %v2527_v3, %v2531_v59  ;;  %v2562_v24 = vmax.f32 %v2526_v17, %v2530_v2 }
 0x202   : > { %v2597_v63 = vmax.f32 %v2565_v25, 0.0  ;;  %v2596_v41 = vmax.f32 %v2564_v58, 0.0 }
 0x203   : > { %v2595_v40 = vmax.f32 %v2563_v23, 0.0  ;;  %v2594_v9 = vmax.f32 %v2562_v24, 0.0 }
 0x204   : > { %v3071_v29 = vpack.c.bf16 %v2597_v63, %v2597_v63  ;;  %v3070_v27 = vpack.c.bf16 %v2596_v41, %v2596_v41 }
 0x205   : > { %v3069_v12 = vpack.c.bf16 %v2595_v40, %v2595_v40  ;;  %v3068_v33 = vpack.c.bf16 %v2594_v9, %v2594_v9 }
 0x206   : > { %2757 = vst.msk [vmem:[%s4433_s7 + $0x78] sm:$0xf] %vm2726_vm5, %v3070_v27  ;;  %2758 = vst.msk [vmem:[%s4433_s7 + $0x7c] sm:$0xf] %vm2726_vm5, %v3071_v29 }
 0x207   : > { %2755 = vst.msk [vmem:[%s4433_s7 + $0x70] sm:$0xf] %vm2726_vm5, %v3068_v33  ;;  %2756 = vst.msk [vmem:[%s4433_s7 + $0x74] sm:$0xf] %vm2726_vm5, %v3069_v12 }
 0x208   : > { %3612 = shalt.err (!%p3609_p5)
}
 0x209   : > { %s3613_s24 = scalar_lea.hbm %s4552_s12, 2048  ;;  %s3617_s30 = scalar_lea.hbm %s4616_s4, 8192 }
 0x20a   : > { %p3614_p6 = scmp.ne.s32.totalorder %s4552_s12, %s3613_s24  ;;  %p3618_p10 = scmp.lt.u32.totalorder %s4552_s12, %s4616_s4 }
 0x20b   : > { %p3619_p11 = scmp.lt.u32.totalorder %s3617_s30, %s3613_s24  ;;  %p3621_p13 = scmp.lt.u32.totalorder %s3613_s24, %s4552_s12 }
 0x20c   : > { %p3615_p7 = pnand %p3614_p6, %p3748_p4 }
 0x20d   : > { %p3620_p12 = por %p3619_p11, %p3618_p10 }
 0x20e   : > { %p3616_p9 = pneg %p3615_p7 }
 0x20f   : > { %p3622_p0 = por %p3621_p13, %p3620_p12 }
 0x211   : > { %p3623_p1 = pnand %p3622_p0, %p3616_p9 }
 0x213   : > { %3626 = shalt.err (!%p3623_p1)
}
 0x214   : > { %s3681_s7 = smov 64   ;;  %s3682_s8 = smov 4  }
 0x215   : > { %3345 = dma.vmem_to_hbm [thread:$0]  (%p3748_p4), %s4554_s9, 2048, %s4552_s12, %s4566_s18, %s3681_s7, %s3681_s7, %s3682_s8  }
 0x216 PF: > { %p3351_p2 = scmp.ge.s32.totalorder %s3677_s20, 2  ;;  %s2791_s10 = sand.u32 1, %s3657_s15  }
 0x217   : > { %s2792_s11 = scalar_lea.sflag [#allocation3], %s2791_s10 }
 0x218   : > { %p3348_p3 = pnand %p3351_p2, %p3755_p8 }
 0x21a   : > { %3652 = dma.done.wait (!%p3348_p3), %s2792_s11, 2048  }
 0x21b   : > { %3654 = vsyncadd (!%p3348_p3), %s2792_s11, 4294965248  ;;  %s17_s20 = sadd.s32 1, %s3677_s20   ;;  %s4675_s15 = smov %s3661_s16 }
 0x21c   : > { %p14_p5 = scmp.ge.s32.totalorder %s17_s20, 6   ;;  %s4676_s16 = smov %s3665_s17 }
 0x21d   : > { %s4677_s17 = smov %s3761_s28  ;;  %s4678_s18 = smov %s3673_s19 }
 0x21e   : > { %s4679_s19 = smov %s4681_s23  ;;  %16 = sbr.rel (!%p14_p5) target bundleno = 4 (0x4), region = 72 }
 0x225   :  { %2797 = vsyncpa [#allocation3], 1 }
 0x226   :  { %2799 = vsyncpa [#allocation3 + $0x1], 1 }

</bundles_post_ra>
